<compile_context>
chip_gen: v7x
topology: tpu7x:2x2x1
jax: 0.10.0
libtpu: 0.0.40
codegen_flags: <defaults>
</compile_context>

<pallas_src>
import functools

import jax
import jax.numpy as jnp
from jax.experimental import pallas as pl
from jax.experimental.pallas import tpu as pltpu


def _posterior_encoder_kernel(
    lens_ref,                         # scalar-prefetch: (B,) int32 in SMEM
    x_ref, g_ref, noise_ref,          # per-batch activation blocks
    pre_w, pre_b,
    in_w, in_b,
    cond_w, cond_b,
    rs_w, rs_b,
    proj_w, proj_b,
    out_ref,                          # fused (1, T, 3*out_ch) slab: [m | logs | z]
    h_pad_ref, stage_ref, out_acc_ref, cond_ref,   # VMEM scratch
    *, hidden, out_ch, kernel_size, dilation_rate, n_layers, max_pad, act_dtype,
):
    b = pl.program_id(0)
    T = x_ref.shape[1]
    H = hidden
    K = kernel_size
    bf16 = jnp.bfloat16

    # sequence_mask(x_lengths, T) for this batch element (hoisted once)
    length = lens_ref[b]
    mask = (jax.lax.broadcasted_iota(jnp.int32, (T, 1), 0) < length).astype(jnp.float32)
    mask_h = jnp.broadcast_to(mask, (T, H))

    # Zero only the halo rows of the padded hidden-state scratch; the center
    # T rows are fully rewritten below (pre conv) and on every layer, so
    # zeroing them would be pure wasted store bandwidth.
    if max_pad > 0:
        halo_zero = jnp.zeros((max_pad, H), jnp.float32)
        h_pad_ref[pl.ds(0, max_pad), :] = halo_zero
        h_pad_ref[pl.ds(max_pad + T, max_pad), :] = halo_zero

    # Per-layer global conditioning: g is a single (1, Cg) broadcast speaker
    # embedding row, so the whole cond_layer collapses to n_layers tiny
    # (1, Cg) @ (Cg, 2H) matmuls done once before the layer loop. The in_layer
    # bias is folded into the same row (both are added to x_in).
    g_bf = g_ref[0].astype(bf16)                                    # (1, Cg)
    for i in range(n_layers):
        cond_ref[pl.ds(i, 1), :] = (
            jnp.dot(g_bf, cond_w[i], preferred_element_type=jnp.float32)
            + cond_b[i] + in_b[i])                                  # (1, 2H)

    # pre: 1x1 conv == channel matmul (bf16 operands, f32 accumulate), masked.
    # Hidden state lives in the center of h_pad_ref for the whole WaveNet.
    h_pad_ref[pl.ds(max_pad, T), :] = (
        jnp.dot(x_ref[0].astype(bf16), pre_w[...],
                preferred_element_type=jnp.float32) + pre_b[...]) * mask_h

    def layer_step(i, dil, pad, first):
        h = h_pad_ref[pl.ds(max_pad, T), :]                         # (T, H) f32

        # Dilated conv: stage the K shifted views into a persistent (T, K*H)
        # bf16 scratch (tap-major columns), then one wide matmul with a K*H
        # contraction (best MXU fill, no concatenate relayout / vreg spills).
        if K == 1:
            taps = h.astype(bf16)
        else:
            for j in range(K):
                start = max_pad - pad + j * dil                     # static int
                if start == max_pad:
                    stage_ref[:, j * H:(j + 1) * H] = h.astype(bf16)
                else:
                    stage_ref[:, j * H:(j + 1) * H] = (
                        h_pad_ref[pl.ds(start, T), :].astype(bf16))
            taps = stage_ref[...]
        x_in = (jnp.dot(taps, in_w[i], preferred_element_type=jnp.float32)
                + cond_ref[pl.ds(i, 1), :])                         # (T, 2H)

        # fused_add_tanh_sigmoid_multiply (bf16 on v6e/v7x EUP, f32 on v5e)
        gate = x_in.astype(act_dtype)
        acts = jnp.tanh(gate[:, :H]) * jax.nn.sigmoid(gate[:, H:])

        # res/skip 1x1 conv; the last layer's weights live entirely in the
        # skip half (res half exactly zero), so the update rule is uniform.
        res_skip = (jnp.dot(acts.astype(bf16), rs_w[i],
                            preferred_element_type=jnp.float32) + rs_b[i])
        h_pad_ref[pl.ds(max_pad, T), :] = (h + res_skip[:, :H]) * mask_h
        if first:
            out_acc_ref[...] = res_skip[:, H:]                      # first write, no pre-zero
        else:
            out_acc_ref[...] = out_acc_ref[...] + res_skip[:, H:]

    if dilation_rate == 1 and n_layers <= 8:
        # small layer count: full static unroll (max scheduler visibility)
        pad = (K - 1) // 2
        for i in range(n_layers):
            layer_step(i, 1, pad, first=(i == 0))
    elif dilation_rate == 1:
        # identical structure per layer: layer 0 unrolled (first write of the
        # skip accumulator), remaining layers in a partially-unrolled fori_loop
        # with dynamic weight indexing (bounds code size / live ranges).
        pad = (K - 1) // 2
        layer_step(0, 1, pad, first=True)
        rem = n_layers - 1
        unroll = 4 if rem % 4 == 0 else (3 if rem % 3 == 0 else (2 if rem % 2 == 0 else 1))

        def body(i, carry):
            layer_step(i, 1, pad, first=False)
            return carry

        jax.lax.fori_loop(1, n_layers, body, 0, unroll=unroll)
    else:
        # non-unit dilation: pad/dilation differ per layer (static ints) -> unroll.
        for i in range(n_layers):
            dil = dilation_rate ** i
            layer_step(i, dil, ((K - 1) * dil) // 2, first=(i == 0))

    # proj: 1x1 conv, mask, split (m, logs), reparameterize; two direct
    # lane-dense stores ([m|logs] already contiguous in `stats`, then z).
    out_h = out_acc_ref[...] * mask_h
    stats = (jnp.dot(out_h.astype(bf16), proj_w[...],
                     preferred_element_type=jnp.float32) + proj_b[...]) * mask
    m = stats[:, :out_ch]
    logs = stats[:, out_ch:]
    z = (m + noise_ref[0].astype(jnp.float32) * jnp.exp(logs)) * mask
    out_ref[0, :, :2 * out_ch] = stats
    out_ref[0, :, 2 * out_ch:] = z


def _device_kind():
    try:
        return jax.devices()[0].device_kind.lower()
    except Exception:
        return ""


def _gated_act_dtype():
    kind = _device_kind()
    # v6e / v7x have bf16-native VPU/EUP (halves the per-layer transcendental
    # work); v5e and older keep the gated activation in f32.
    return jnp.bfloat16 if ("v6" in kind or "v7" in kind) else jnp.float32


def _vmem_limit_bytes(buffer_bytes):
    kind = _device_kind()
    cap = (56 << 20) if "v7" in kind else (100 << 20)   # v7x: 64 MiB physical / core
    want = int(buffer_bytes * 1.5) + (4 << 20)
    return max(32 << 20, min(cap, want))


def posterior_encoder_forward(x, x_lengths, g, noise, params, *,
                              hidden, out_ch, kernel_size, dilation_rate, n_layers):
    """x: (B, Cin, T), x_lengths: (B,), g: (B, gin, 1) speaker embedding,
    noise: (B, out_ch, T) (stands in for torch.randn_like(m)).

    Returns z, m, logs in (B, out_ch, T) and mask in (B, 1, T), matching the
    PyTorch forward.
    """
    B, Cin, T = x.shape
    assert g.shape[0] == B and g.shape[2] == 1, "g must be a broadcast (B, gin, 1) embedding"
    # TODO(synk): support time-varying g (B, gin, T) — needs a (T, Cg) cond matmul per layer.
    Cg = g.shape[1]
    max_pad = ((kernel_size - 1) * dilation_rate ** (n_layers - 1)) // 2

    # glue: NCT -> (B, T, C); matmul operands downcast to bf16 at the boundary
    x_btc = jnp.transpose(x, (0, 2, 1)).astype(jnp.bfloat16)       # (B, T, Cin)
    g_row = jnp.transpose(g, (0, 2, 1)).astype(jnp.bfloat16)       # (B, 1, Cg)
    n_btc = jnp.transpose(noise, (0, 2, 1)).astype(jnp.bfloat16)   # (B, T, out_ch), bf16 DMA

    (pre_w, pre_b, in_w, in_b, cond_w, cond_b,
     rs_w, rs_b, proj_w, proj_b) = params
    weights = (pre_w, pre_b, in_w, in_b, cond_w, cond_b, rs_w, rs_b, proj_w, proj_b)

    def const_spec(a):
        nd = a.ndim
        # constant-index block: single-buffer it — the block index never
        # changes, so double-buffering would only burn VMEM.
        return pl.BlockSpec(a.shape, lambda b, lens, _nd=nd: (0,) * _nd,
                            pipeline_mode=pl.Buffered(1))

    act_dtype = _gated_act_dtype()
    kernel = functools.partial(
        _posterior_encoder_kernel,
        hidden=hidden, out_ch=out_ch, kernel_size=kernel_size,
        dilation_rate=dilation_rate, n_layers=n_layers, max_pad=max_pad,
        act_dtype=act_dtype)

    scratch_shapes = [
        pltpu.VMEM((T + 2 * max_pad, hidden), jnp.float32),        # padded hidden state
        pltpu.VMEM((T, kernel_size * hidden), jnp.bfloat16),       # dilated-conv tap staging
        pltpu.VMEM((T, hidden), jnp.float32),                      # skip accumulator
        pltpu.VMEM((n_layers, 2 * hidden), jnp.float32),           # per-layer cond rows
    ]

    # footprint-based VMEM limit: weights single-buffered, per-batch
    # activation/output blocks double-buffered, plus scratch.
    weight_bytes = sum(int(w.size) * w.dtype.itemsize for w in weights)
    act_bytes = 2 * (T * Cin * 2 + Cg * 2 + T * out_ch * 2 + T * 3 * out_ch * 4)
    scratch_bytes = ((T + 2 * max_pad) * hidden * 4 + T * kernel_size * hidden * 2
                     + T * hidden * 4 + n_layers * 2 * hidden * 4)
    vmem_limit = _vmem_limit_bytes(weight_bytes + act_bytes + scratch_bytes)

    # TODO(synk): for very long T on v7x, add a T-tile grid axis (~512 rows,
    #   "parallel") with a cumulative receptive-field halo so both TensorCores
    #   get work and per-core VMEM stays well under 64 MiB.
    grid_spec = pltpu.PrefetchScalarGridSpec(
        num_scalar_prefetch=1,
        grid=(B,),
        in_specs=[
            pl.BlockSpec((1, T, Cin), lambda b, lens: (b, 0, 0)),
            pl.BlockSpec((1, 1, Cg), lambda b, lens: (b, 0, 0)),
            pl.BlockSpec((1, T, out_ch), lambda b, lens: (b, 0, 0)),
        ] + [const_spec(w) for w in weights],
        out_specs=pl.BlockSpec((1, T, 3 * out_ch), lambda b, lens: (b, 0, 0)),
        scratch_shapes=scratch_shapes,
    )

    slab = pl.pallas_call(
        kernel,
        grid_spec=grid_spec,
        out_shape=jax.ShapeDtypeStruct((B, T, 3 * out_ch), jnp.float32),
        compiler_params=pltpu.CompilerParams(
            dimension_semantics=("parallel",),          # batch elements are independent
            vmem_limit_bytes=vmem_limit),
    )(x_lengths.astype(jnp.int32), x_btc, g_row, n_btc, *weights)

    # glue: split fused slab and go back to PyTorch NCT layout
    slab = jnp.transpose(slab, (0, 2, 1))               # (B, 3*out_ch, T)
    m = slab[:, :out_ch]
    logs = slab[:, out_ch:2 * out_ch]
    z = slab[:, 2 * out_ch:]
    mask = (jnp.arange(T)[None, :] < x_lengths[:, None]).astype(jnp.float32)[:, None, :]
    return z, m, logs, mask


def posterior_encoder_reference(x, x_lengths, g, noise, params, *, hidden, out_ch,
                                kernel_size, dilation_rate, n_layers, act_dtype):
    """Pure-JAX reference mirroring the kernel's dtype policy (for validation)."""
    (pre_w, pre_b, in_w, in_b, cond_w, cond_b,
     rs_w, rs_b, proj_w, proj_b) = params
    B, Cin, T = x.shape
    H, K = hidden, kernel_size
    bf16, f32 = jnp.bfloat16, jnp.float32

    mask = (jnp.arange(T)[None, :] < x_lengths[:, None]).astype(f32)[..., None]  # (B,T,1)
    xb = jnp.transpose(x, (0, 2, 1)).astype(bf16)
    gb = jnp.transpose(g, (0, 2, 1)).astype(bf16)
    nb = jnp.transpose(noise, (0, 2, 1)).astype(bf16).astype(f32)

    h = (jnp.einsum("btc,ch->bth", xb, pre_w, preferred_element_type=f32) + pre_b) * mask
    out_acc = jnp.zeros((B, T, H), f32)
    for i in range(n_layers):
        dil = dilation_rate ** i
        pad = ((K - 1) * dil) // 2
        hp = jnp.pad(h, ((0, 0), (pad, pad), (0, 0)))
        taps = jnp.concatenate([hp[:, j * dil:j * dil + T, :] for j in range(K)],
                               axis=-1).astype(bf16)
        cond = (jnp.einsum("boc,ch->boh", gb, cond_w[i], preferred_element_type=f32)
                + cond_b[i] + in_b[i])
        x_in = jnp.einsum("btk,kh->bth", taps, in_w[i], preferred_element_type=f32) + cond
        gate = x_in.astype(act_dtype)
        acts = jnp.tanh(gate[..., :H]) * jax.nn.sigmoid(gate[..., H:])
        res_skip = (jnp.einsum("bth,hk->btk", acts.astype(bf16), rs_w[i],
                               preferred_element_type=f32) + rs_b[i])
        h = (h + res_skip[..., :H]) * mask
        out_acc = out_acc + res_skip[..., H:]
    out_h = out_acc * mask
    stats = (jnp.einsum("bth,hk->btk", out_h.astype(bf16), proj_w,
                        preferred_element_type=f32) + proj_b) * mask
    m = stats[..., :out_ch]
    logs = stats[..., out_ch:]
    z = (m + nb * jnp.exp(logs)) * mask
    tr = lambda a: jnp.transpose(a, (0, 2, 1))
    return tr(z), tr(m), tr(logs), jnp.transpose(mask, (0, 2, 1))


def init_params(key, in_ch, out_ch, hidden, kernel_size, dilation_rate,
                n_layers, gin_ch, scale=0.1):
    """Deterministic synthetic parameters with the shapes the module implies.

    PyTorch Conv1d weights are (C_out, C_in, k); stored here pre-transposed
    (and pre-flattened / pre-sliced per layer) for the (T, C) matmul
    formulation, with weights in bf16 and biases in f32.
    """
    keys = jax.random.split(key, 8)
    f32, bf16 = jnp.float32, jnp.bfloat16

    # pre: Conv1d(in_ch, hidden, 1)
    pre_w = (scale * jax.random.normal(keys[0], (hidden, in_ch), f32)).T.astype(bf16)
    pre_b = scale * jax.random.normal(keys[1], (1, hidden), f32)

    # WaveNet in_layers: Conv1d(hidden, 2*hidden, k, dilation=dilation_rate**i)
    in_w, in_b = [], []
    k_in = jax.random.split(keys[2], n_layers)
    for i in range(n_layers):
        w = scale * jax.random.normal(k_in[i], (2 * hidden, hidden, kernel_size), f32)
        # (2H, H, k) -> (k, H, 2H) -> (k*H, 2H): rows tap-major to match the
        # staged shifted views in the kernel.
        in_w.append(jnp.transpose(w, (2, 1, 0)).reshape(kernel_size * hidden, 2 * hidden))
        in_b.append(scale * jax.random.normal(jax.random.fold_in(k_in[i], 1),
                                              (1, 2 * hidden), f32))
    in_w = jnp.stack(in_w).astype(bf16)        # (L, k*H, 2H)
    in_b = jnp.stack(in_b)                     # (L, 1, 2H)

    # WaveNet cond_layer: Conv1d(gin, 2*hidden*n_layers, 1), pre-split per layer
    cw = scale * jax.random.normal(keys[3], (2 * hidden * n_layers, gin_ch), f32)
    cond_w = jnp.transpose(cw.reshape(n_layers, 2 * hidden, gin_ch), (0, 2, 1)).astype(bf16)
    cb = scale * jax.random.normal(keys[4], (2 * hidden * n_layers,), f32)
    cond_b = cb.reshape(n_layers, 1, 2 * hidden)

    # WaveNet res_skip_layers: Conv1d(hidden, 2*hidden, 1); last layer has only
    # `hidden` outputs which feed the skip path -> placed in the skip half so
    # the in-kernel layer update stays uniform (res half exactly zero).
    rs_w, rs_b = [], []
    k_rs = jax.random.split(keys[5], n_layers)
    for i in range(n_layers):
        if i < n_layers - 1:
            w = (scale * jax.random.normal(k_rs[i], (2 * hidden, hidden), f32)).T   # (H, 2H)
            bvec = scale * jax.random.normal(jax.random.fold_in(k_rs[i], 1),
                                             (1, 2 * hidden), f32)
        else:
            w_last = (scale * jax.random.normal(k_rs[i], (hidden, hidden), f32)).T  # (H, H)
            b_last = scale * jax.random.normal(jax.random.fold_in(k_rs[i], 1),
                                               (1, hidden), f32)
            w = jnp.concatenate([jnp.zeros((hidden, hidden), f32), w_last], axis=1)
            bvec = jnp.concatenate([jnp.zeros((1, hidden), f32), b_last], axis=1)
        rs_w.append(w)
        rs_b.append(bvec)
    rs_w = jnp.stack(rs_w).astype(bf16)        # (L, H, 2H)
    rs_b = jnp.stack(rs_b)                     # (L, 1, 2H)

    # proj: Conv1d(hidden, 2*out_ch, 1)
    proj_w = (scale * jax.random.normal(keys[6], (2 * out_ch, hidden), f32)).T.astype(bf16)
    proj_b = scale * jax.random.normal(keys[7], (1, 2 * out_ch), f32)

    return (pre_w, pre_b, in_w, in_b, cond_w, cond_b, rs_w, rs_b, proj_w, proj_b)


if __name__ == "__main__":
    # small shapes consistent with the module
    B, Cin, T = 2, 16, 16
    hidden, out_ch = 32, 8
    kernel_size, dilation_rate, n_layers = 5, 1, 4
    gin_ch = 16

    key = jax.random.PRNGKey(0)
    kx, kg, kn, kp = jax.random.split(key, 4)

    x = jax.random.normal(kx, (B, Cin, T), jnp.float32)      # spectrogram-like input, NCT
    g = jax.random.normal(kg, (B, gin_ch, 1), jnp.float32)   # broadcast speaker embedding
    # noise stands in for torch.randn_like(m) (reparameterization trick)
    noise = jax.random.normal(kn, (B, out_ch, T), jnp.float32)
    x_lengths = jnp.array([T, 11], jnp.int32)

    params = init_params(kp, Cin, out_ch, hidden, kernel_size,
                         dilation_rate, n_layers, gin_ch)

    z, m, logs, mask = posterior_encoder_forward(
        x, x_lengths, g, noise, params,
        hidden=hidden, out_ch=out_ch, kernel_size=kernel_size,
        dilation_rate=dilation_rate, n_layers=n_layers)
    jax.block_until_ready((z, m, logs, mask))

    assert z.shape == (B, out_ch, T) and m.shape == (B, out_ch, T)
    assert logs.shape == (B, out_ch, T) and mask.shape == (B, 1, T)

    # numerical check against a pure-JAX reference with the same dtype policy
    z_r, m_r, logs_r, mask_r = posterior_encoder_reference(
        x, x_lengths, g, noise, params,
        hidden=hidden, out_ch=out_ch, kernel_size=kernel_size,
        dilation_rate=dilation_rate, n_layers=n_layers,
        act_dtype=_gated_act_dtype())
    err = max(float(jnp.max(jnp.abs(z - z_r))),
              float(jnp.max(jnp.abs(m - m_r))),
              float(jnp.max(jnp.abs(logs - logs_r))),
              float(jnp.max(jnp.abs(mask - mask_r))))
    assert err < 3e-2, f"max abs error vs reference too large: {err}"
    print("KERNEL_OK")
</pallas_src>

<mosaic_0001>
module attributes {stable_mosaic.version = 11 : i64} {
  func.func @_posterior_encoder_kernel(%arg0: i32, %arg1: memref<2xi32, #tpu.memory_space<smem>>, %arg2: memref<1x16x16xbf16, #tpu.memory_space<vmem>>, %arg3: memref<1x1x16xbf16, #tpu.memory_space<vmem>>, %arg4: memref<1x16x8xbf16, #tpu.memory_space<vmem>>, %arg5: memref<16x32xbf16, #tpu.memory_space<vmem>>, %arg6: memref<1x32xf32, #tpu.memory_space<vmem>>, %arg7: memref<4x160x64xbf16, #tpu.memory_space<vmem>>, %arg8: memref<4x1x64xf32, #tpu.memory_space<vmem>>, %arg9: memref<4x16x64xbf16, #tpu.memory_space<vmem>>, %arg10: memref<4x1x64xf32, #tpu.memory_space<vmem>>, %arg11: memref<4x32x64xbf16, #tpu.memory_space<vmem>>, %arg12: memref<4x1x64xf32, #tpu.memory_space<vmem>>, %arg13: memref<32x16xbf16, #tpu.memory_space<vmem>>, %arg14: memref<1x16xf32, #tpu.memory_space<vmem>>, %arg15: memref<1x16x24xf32, #tpu.memory_space<vmem>>, %arg16: memref<20x32xf32, #tpu.memory_space<vmem>>, %arg17: memref<16x160xbf16, #tpu.memory_space<vmem>>, %arg18: memref<16x32xf32, #tpu.memory_space<vmem>>, %arg19: memref<4x64xf32, #tpu.memory_space<vmem>>) attributes {dimension_semantics = [#tpu.dimension_semantics<parallel>], iteration_bounds = array<i64: 2>, scalar_prefetch = 1 : i64, scratch_operands = 4 : i64, tpu.core_type = #tpu.core_type<tc>, window_params = [{transform_indices = @transform_0, window_bounds = array<i64: 1, 16, 16>}, {transform_indices = @transform_1, window_bounds = array<i64: 1, 1, 16>}, {transform_indices = @transform_2, window_bounds = array<i64: 1, 16, 8>}, {pipeline_mode = #tpu.pipeline_mode<synchronous>, transform_indices = @transform_3, window_bounds = array<i64: 16, 32>}, {pipeline_mode = #tpu.pipeline_mode<synchronous>, transform_indices = @transform_4, window_bounds = array<i64: 1, 32>}, {pipeline_mode = #tpu.pipeline_mode<synchronous>, transform_indices = @transform_5, window_bounds = array<i64: 4, 160, 64>}, {pipeline_mode = #tpu.pipeline_mode<synchronous>, transform_indices = @transform_6, window_bounds = array<i64: 4, 1, 64>}, {pipeline_mode = #tpu.pipeline_mode<synchronous>, transform_indices = @transform_7, window_bounds = array<i64: 4, 16, 64>}, {pipeline_mode = #tpu.pipeline_mode<synchronous>, transform_indices = @transform_8, window_bounds = array<i64: 4, 1, 64>}, {pipeline_mode = #tpu.pipeline_mode<synchronous>, transform_indices = @transform_9, window_bounds = array<i64: 4, 32, 64>}, {pipeline_mode = #tpu.pipeline_mode<synchronous>, transform_indices = @transform_10, window_bounds = array<i64: 4, 1, 64>}, {pipeline_mode = #tpu.pipeline_mode<synchronous>, transform_indices = @transform_11, window_bounds = array<i64: 32, 16>}, {pipeline_mode = #tpu.pipeline_mode<synchronous>, transform_indices = @transform_12, window_bounds = array<i64: 1, 16>}, {transform_indices = @transform_13, window_bounds = array<i64: 1, 16, 24>}]} {
    %0 = arith.index_cast %arg0 : i32 to index
    %1 = memref.load %arg1[%0] : memref<2xi32, #tpu.memory_space<smem>>
    %2 = tpu.iota {dimensions = array<i32: 0>} : vector<16x1xi32>
    %3 = vector.broadcast %1 : i32 to vector<16x1xi32>
    %4 = arith.cmpi slt, %2, %3 : vector<16x1xi32>
    %5 = arith.extui %4 : vector<16x1xi1> to vector<16x1xi32>
    %6 = arith.sitofp %5 : vector<16x1xi32> to vector<16x1xf32>
    %7 = vector.shape_cast %6 : vector<16x1xf32> to vector<16x1xf32>
    %8 = vector.broadcast %7 : vector<16x1xf32> to vector<16x32xf32>
    %cst = arith.constant 0.000000e+00 : f32
    %9 = vector.broadcast %cst : f32 to vector<2x32xf32>
    %c0 = arith.constant 0 : index
    %c0_0 = arith.constant 0 : index
    %10 = vector.load %arg16[%c0, %c0_0] : memref<20x32xf32, #tpu.memory_space<vmem>>, vector<2x32xf32>
    tpu.vector_store %arg16[%c0, %c0_0], %9 {strides = array<i32>} : memref<20x32xf32, #tpu.memory_space<vmem>>, vector<2x32xf32>,
    %c18 = arith.constant 18 : index
    %c0_1 = arith.constant 0 : index
    %11 = vector.load %arg16[%c18, %c0_1] : memref<20x32xf32, #tpu.memory_space<vmem>>, vector<2x32xf32>
    tpu.vector_store %arg16[%c18, %c0_1], %9 {strides = array<i32>} : memref<20x32xf32, #tpu.memory_space<vmem>>, vector<2x32xf32>,
    %c0_2 = arith.constant 0 : index
    %c0_3 = arith.constant 0 : index
    %c0_4 = arith.constant 0 : index
    %12 = vector.load %arg3[%c0_2, %c0_3, %c0_4] : memref<1x1x16xbf16, #tpu.memory_space<vmem>>, vector<1x1x16xbf16>
    %13 = vector.shape_cast %12 : vector<1x1x16xbf16> to vector<1x16xbf16>
    %c0_5 = arith.constant 0 : index
    %c0_6 = arith.constant 0 : index
    %c0_7 = arith.constant 0 : index
    %14 = vector.load %arg9[%c0_5, %c0_6, %c0_7] : memref<4x16x64xbf16, #tpu.memory_space<vmem>>, vector<1x16x64xbf16>
    %15 = vector.shape_cast %14 : vector<1x16x64xbf16> to vector<16x64xbf16>
    %cst_8 = arith.constant dense<0.000000e+00> : vector<1x64xf32>
    %16 = tpu.matmul %13, %15, %cst_8 {dimension_numbers = #tpu.dot_dimension_numbers<[1], [0], [0], [1], [0, 0, 1, 1], [], []>} : vector<1x16xbf16>, vector<16x64xbf16>, vector<1x64xf32> -> vector<1x64xf32>
    %c0_9 = arith.constant 0 : index
    %c0_10 = arith.constant 0 : index
    %c0_11 = arith.constant 0 : index
    %17 = vector.load %arg10[%c0_9, %c0_10, %c0_11] : memref<4x1x64xf32, #tpu.memory_space<vmem>>, vector<1x1x64xf32>
    %18 = vector.shape_cast %17 : vector<1x1x64xf32> to vector<1x64xf32>
    %19 = arith.addf %16, %18 : vector<1x64xf32>
    %c0_12 = arith.constant 0 : index
    %c0_13 = arith.constant 0 : index
    %c0_14 = arith.constant 0 : index
    %20 = vector.load %arg8[%c0_12, %c0_13, %c0_14] : memref<4x1x64xf32, #tpu.memory_space<vmem>>, vector<1x1x64xf32>
    %21 = vector.shape_cast %20 : vector<1x1x64xf32> to vector<1x64xf32>
    %22 = arith.addf %19, %21 : vector<1x64xf32>
    %c0_15 = arith.constant 0 : index
    %c0_16 = arith.constant 0 : index
    %23 = vector.load %arg19[%c0_15, %c0_16] : memref<4x64xf32, #tpu.memory_space<vmem>>, vector<1x64xf32>
    tpu.vector_store %arg19[%c0_15, %c0_16], %22 {strides = array<i32>} : memref<4x64xf32, #tpu.memory_space<vmem>>, vector<1x64xf32>,
    %c1 = arith.constant 1 : index
    %c0_17 = arith.constant 0 : index
    %c0_18 = arith.constant 0 : index
    %24 = vector.load %arg9[%c1, %c0_17, %c0_18] : memref<4x16x64xbf16, #tpu.memory_space<vmem>>, vector<1x16x64xbf16>
    %25 = vector.shape_cast %24 : vector<1x16x64xbf16> to vector<16x64xbf16>
    %cst_19 = arith.constant dense<0.000000e+00> : vector<1x64xf32>
    %26 = tpu.matmul %13, %25, %cst_19 {dimension_numbers = #tpu.dot_dimension_numbers<[1], [0], [0], [1], [0, 0, 1, 1], [], []>} : vector<1x16xbf16>, vector<16x64xbf16>, vector<1x64xf32> -> vector<1x64xf32>
    %c1_20 = arith.constant 1 : index
    %c0_21 = arith.constant 0 : index
    %c0_22 = arith.constant 0 : index
    %27 = vector.load %arg10[%c1_20, %c0_21, %c0_22] : memref<4x1x64xf32, #tpu.memory_space<vmem>>, vector<1x1x64xf32>
    %28 = vector.shape_cast %27 : vector<1x1x64xf32> to vector<1x64xf32>
    %29 = arith.addf %26, %28 : vector<1x64xf32>
    %c1_23 = arith.constant 1 : index
    %c0_24 = arith.constant 0 : index
    %c0_25 = arith.constant 0 : index
    %30 = vector.load %arg8[%c1_23, %c0_24, %c0_25] : memref<4x1x64xf32, #tpu.memory_space<vmem>>, vector<1x1x64xf32>
    %31 = vector.shape_cast %30 : vector<1x1x64xf32> to vector<1x64xf32>
    %32 = arith.addf %29, %31 : vector<1x64xf32>
    %c1_26 = arith.constant 1 : index
    %c0_27 = arith.constant 0 : index
    %33 = vector.load %arg19[%c1_26, %c0_27] : memref<4x64xf32, #tpu.memory_space<vmem>>, vector<1x64xf32>
    tpu.vector_store %arg19[%c1_26, %c0_27], %32 {strides = array<i32>} : memref<4x64xf32, #tpu.memory_space<vmem>>, vector<1x64xf32>,
    %c2 = arith.constant 2 : index
    %c0_28 = arith.constant 0 : index
    %c0_29 = arith.constant 0 : index
    %34 = vector.load %arg9[%c2, %c0_28, %c0_29] : memref<4x16x64xbf16, #tpu.memory_space<vmem>>, vector<1x16x64xbf16>
    %35 = vector.shape_cast %34 : vector<1x16x64xbf16> to vector<16x64xbf16>
    %cst_30 = arith.constant dense<0.000000e+00> : vector<1x64xf32>
    %36 = tpu.matmul %13, %35, %cst_30 {dimension_numbers = #tpu.dot_dimension_numbers<[1], [0], [0], [1], [0, 0, 1, 1], [], []>} : vector<1x16xbf16>, vector<16x64xbf16>, vector<1x64xf32> -> vector<1x64xf32>
    %c2_31 = arith.constant 2 : index
    %c0_32 = arith.constant 0 : index
    %c0_33 = arith.constant 0 : index
    %37 = vector.load %arg10[%c2_31, %c0_32, %c0_33] : memref<4x1x64xf32, #tpu.memory_space<vmem>>, vector<1x1x64xf32>
    %38 = vector.shape_cast %37 : vector<1x1x64xf32> to vector<1x64xf32>
    %39 = arith.addf %36, %38 : vector<1x64xf32>
    %c2_34 = arith.constant 2 : index
    %c0_35 = arith.constant 0 : index
    %c0_36 = arith.constant 0 : index
    %40 = vector.load %arg8[%c2_34, %c0_35, %c0_36] : memref<4x1x64xf32, #tpu.memory_space<vmem>>, vector<1x1x64xf32>
    %41 = vector.shape_cast %40 : vector<1x1x64xf32> to vector<1x64xf32>
    %42 = arith.addf %39, %41 : vector<1x64xf32>
    %c2_37 = arith.constant 2 : index
    %c0_38 = arith.constant 0 : index
    %43 = vector.load %arg19[%c2_37, %c0_38] : memref<4x64xf32, #tpu.memory_space<vmem>>, vector<1x64xf32>
    tpu.vector_store %arg19[%c2_37, %c0_38], %42 {strides = array<i32>} : memref<4x64xf32, #tpu.memory_space<vmem>>, vector<1x64xf32>,
    %c3 = arith.constant 3 : index
    %c0_39 = arith.constant 0 : index
    %c0_40 = arith.constant 0 : index
    %44 = vector.load %arg9[%c3, %c0_39, %c0_40] : memref<4x16x64xbf16, #tpu.memory_space<vmem>>, vector<1x16x64xbf16>
    %45 = vector.shape_cast %44 : vector<1x16x64xbf16> to vector<16x64xbf16>
    %cst_41 = arith.constant dense<0.000000e+00> : vector<1x64xf32>
    %46 = tpu.matmul %13, %45, %cst_41 {dimension_numbers = #tpu.dot_dimension_numbers<[1], [0], [0], [1], [0, 0, 1, 1], [], []>} : vector<1x16xbf16>, vector<16x64xbf16>, vector<1x64xf32> -> vector<1x64xf32>
    %c3_42 = arith.constant 3 : index
    %c0_43 = arith.constant 0 : index
    %c0_44 = arith.constant 0 : index
    %47 = vector.load %arg10[%c3_42, %c0_43, %c0_44] : memref<4x1x64xf32, #tpu.memory_space<vmem>>, vector<1x1x64xf32>
    %48 = vector.shape_cast %47 : vector<1x1x64xf32> to vector<1x64xf32>
    %49 = arith.addf %46, %48 : vector<1x64xf32>
    %c3_45 = arith.constant 3 : index
    %c0_46 = arith.constant 0 : index
    %c0_47 = arith.constant 0 : index
    %50 = vector.load %arg8[%c3_45, %c0_46, %c0_47] : memref<4x1x64xf32, #tpu.memory_space<vmem>>, vector<1x1x64xf32>
    %51 = vector.shape_cast %50 : vector<1x1x64xf32> to vector<1x64xf32>
    %52 = arith.addf %49, %51 : vector<1x64xf32>
    %c3_48 = arith.constant 3 : index
    %c0_49 = arith.constant 0 : index
    %53 = vector.load %arg19[%c3_48, %c0_49] : memref<4x64xf32, #tpu.memory_space<vmem>>, vector<1x64xf32>
    tpu.vector_store %arg19[%c3_48, %c0_49], %52 {strides = array<i32>} : memref<4x64xf32, #tpu.memory_space<vmem>>, vector<1x64xf32>,
    %c0_50 = arith.constant 0 : index
    %c0_51 = arith.constant 0 : index
    %c0_52 = arith.constant 0 : index
    %54 = vector.load %arg2[%c0_50, %c0_51, %c0_52] : memref<1x16x16xbf16, #tpu.memory_space<vmem>>, vector<1x16x16xbf16>
    %55 = vector.shape_cast %54 : vector<1x16x16xbf16> to vector<16x16xbf16>
    %c0_53 = arith.constant 0 : index
    %c0_54 = arith.constant 0 : index
    %56 = vector.load %arg5[%c0_53, %c0_54] : memref<16x32xbf16, #tpu.memory_space<vmem>>, vector<16x32xbf16>
    %cst_55 = arith.constant dense<0.000000e+00> : vector<16x32xf32>
    %57 = tpu.matmul %55, %56, %cst_55 {dimension_numbers = #tpu.dot_dimension_numbers<[1], [0], [0], [1], [0, 0, 1, 1], [], []>} : vector<16x16xbf16>, vector<16x32xbf16>, vector<16x32xf32> -> vector<16x32xf32>
    %c0_56 = arith.constant 0 : index
    %c0_57 = arith.constant 0 : index
    %58 = vector.load %arg6[%c0_56, %c0_57] : memref<1x32xf32, #tpu.memory_space<vmem>>, vector<1x32xf32>
    %59 = vector.broadcast %58 : vector<1x32xf32> to vector<16x32xf32>
    %60 = arith.addf %57, %59 : vector<16x32xf32>
    %61 = arith.mulf %60, %8 : vector<16x32xf32>
    %c2_58 = arith.constant 2 : index
    %c0_59 = arith.constant 0 : index
    %62 = vector.load %arg16[%c2_58, %c0_59] : memref<20x32xf32, #tpu.memory_space<vmem>>, vector<16x32xf32>
    tpu.vector_store %arg16[%c2_58, %c0_59], %61 {strides = array<i32>} : memref<20x32xf32, #tpu.memory_space<vmem>>, vector<16x32xf32>,
    %c2_60 = arith.constant 2 : index
    %c0_61 = arith.constant 0 : index
    %63 = vector.load %arg16[%c2_60, %c0_61] : memref<20x32xf32, #tpu.memory_space<vmem>>, vector<16x32xf32>
    %c0_62 = arith.constant 0 : index
    %c0_63 = arith.constant 0 : index
    %64 = vector.load %arg16[%c0_62, %c0_63] : memref<20x32xf32, #tpu.memory_space<vmem>>, vector<16x32xf32>
    %65 = arith.truncf %64 : vector<16x32xf32> to vector<16x32xbf16>
    %c0_64 = arith.constant 0 : index
    %c0_65 = arith.constant 0 : index
    %66 = vector.load %arg17[%c0_64, %c0_65] : memref<16x160xbf16, #tpu.memory_space<vmem>>, vector<16x32xbf16>
    tpu.vector_store %arg17[%c0_64, %c0_65], %65 {strides = array<i32>} : memref<16x160xbf16, #tpu.memory_space<vmem>>, vector<16x32xbf16>,
    %c1_66 = arith.constant 1 : index
    %c0_67 = arith.constant 0 : index
    %67 = vector.load %arg16[%c1_66, %c0_67] : memref<20x32xf32, #tpu.memory_space<vmem>>, vector<16x32xf32>
    %68 = arith.truncf %67 : vector<16x32xf32> to vector<16x32xbf16>
    %c0_68 = arith.constant 0 : index
    %c32 = arith.constant 32 : index
    %69 = vector.load %arg17[%c0_68, %c32] : memref<16x160xbf16, #tpu.memory_space<vmem>>, vector<16x32xbf16>
    tpu.vector_store %arg17[%c0_68, %c32], %68 {strides = array<i32>} : memref<16x160xbf16, #tpu.memory_space<vmem>>, vector<16x32xbf16>,
    %70 = arith.truncf %63 : vector<16x32xf32> to vector<16x32xbf16>
    %c0_69 = arith.constant 0 : index
    %c64 = arith.constant 64 : index
    %71 = vector.load %arg17[%c0_69, %c64] : memref<16x160xbf16, #tpu.memory_space<vmem>>, vector<16x32xbf16>
    tpu.vector_store %arg17[%c0_69, %c64], %70 {strides = array<i32>} : memref<16x160xbf16, #tpu.memory_space<vmem>>, vector<16x32xbf16>,
    %c3_70 = arith.constant 3 : index
    %c0_71 = arith.constant 0 : index
    %72 = vector.load %arg16[%c3_70, %c0_71] : memref<20x32xf32, #tpu.memory_space<vmem>>, vector<16x32xf32>
    %73 = arith.truncf %72 : vector<16x32xf32> to vector<16x32xbf16>
    %c0_72 = arith.constant 0 : index
    %c96 = arith.constant 96 : index
    %74 = vector.load %arg17[%c0_72, %c96] : memref<16x160xbf16, #tpu.memory_space<vmem>>, vector<16x32xbf16>
    tpu.vector_store %arg17[%c0_72, %c96], %73 {strides = array<i32>} : memref<16x160xbf16, #tpu.memory_space<vmem>>, vector<16x32xbf16>,
    %c4 = arith.constant 4 : index
    %c0_73 = arith.constant 0 : index
    %75 = vector.load %arg16[%c4, %c0_73] : memref<20x32xf32, #tpu.memory_space<vmem>>, vector<16x32xf32>
    %76 = arith.truncf %75 : vector<16x32xf32> to vector<16x32xbf16>
    %c0_74 = arith.constant 0 : index
    %c128 = arith.constant 128 : index
    %77 = vector.load %arg17[%c0_74, %c128] : memref<16x160xbf16, #tpu.memory_space<vmem>>, vector<16x32xbf16>
    tpu.vector_store %arg17[%c0_74, %c128], %76 {strides = array<i32>} : memref<16x160xbf16, #tpu.memory_space<vmem>>, vector<16x32xbf16>,
    %c0_75 = arith.constant 0 : index
    %c0_76 = arith.constant 0 : index
    %78 = vector.load %arg17[%c0_75, %c0_76] : memref<16x160xbf16, #tpu.memory_space<vmem>>, vector<16x160xbf16>
    %c0_77 = arith.constant 0 : index
    %c0_78 = arith.constant 0 : index
    %c0_79 = arith.constant 0 : index
    %79 = vector.load %arg7[%c0_77, %c0_78, %c0_79] : memref<4x160x64xbf16, #tpu.memory_space<vmem>>, vector<1x160x64xbf16>
    %80 = vector.shape_cast %79 : vector<1x160x64xbf16> to vector<160x64xbf16>
    %cst_80 = arith.constant dense<0.000000e+00> : vector<16x64xf32>
    %81 = tpu.matmul %78, %80, %cst_80 {dimension_numbers = #tpu.dot_dimension_numbers<[1], [0], [0], [1], [0, 0, 1, 1], [], []>} : vector<16x160xbf16>, vector<160x64xbf16>, vector<16x64xf32> -> vector<16x64xf32>
    %c0_81 = arith.constant 0 : index
    %c0_82 = arith.constant 0 : index
    %82 = vector.load %arg19[%c0_81, %c0_82] : memref<4x64xf32, #tpu.memory_space<vmem>>, vector<1x64xf32>
    %83 = vector.broadcast %82 : vector<1x64xf32> to vector<16x64xf32>
    %84 = arith.addf %81, %83 : vector<16x64xf32>
    %85 = vector.extract_strided_slice %84 {offsets = [0, 0], sizes = [16, 32], strides = [1, 1]} : vector<16x64xf32> to vector<16x32xf32>
    %86 = math.tanh %85 : vector<16x32xf32>
    %87 = vector.extract_strided_slice %84 {offsets = [0, 32], sizes = [16, 32], strides = [1, 1]} : vector<16x64xf32> to vector<16x32xf32>
    %88 = arith.negf %87 : vector<16x32xf32>
    %89 = math.exp %88 : vector<16x32xf32>
    %cst_83 = arith.constant 1.000000e+00 : f32
    %90 = vector.broadcast %cst_83 : f32 to vector<16x32xf32>
    %91 = arith.addf %90, %89 : vector<16x32xf32>
    %92 = arith.divf %90, %91 : vector<16x32xf32>
    %93 = arith.mulf %86, %92 : vector<16x32xf32>
    %94 = arith.truncf %93 : vector<16x32xf32> to vector<16x32xbf16>
    %c0_84 = arith.constant 0 : index
    %c0_85 = arith.constant 0 : index
    %c0_86 = arith.constant 0 : index
    %95 = vector.load %arg11[%c0_84, %c0_85, %c0_86] : memref<4x32x64xbf16, #tpu.memory_space<vmem>>, vector<1x32x64xbf16>
    %96 = vector.shape_cast %95 : vector<1x32x64xbf16> to vector<32x64xbf16>
    %cst_87 = arith.constant dense<0.000000e+00> : vector<16x64xf32>
    %97 = tpu.matmul %94, %96, %cst_87 {dimension_numbers = #tpu.dot_dimension_numbers<[1], [0], [0], [1], [0, 0, 1, 1], [], []>} : vector<16x32xbf16>, vector<32x64xbf16>, vector<16x64xf32> -> vector<16x64xf32>
    %c0_88 = arith.constant 0 : index
    %c0_89 = arith.constant 0 : index
    %c0_90 = arith.constant 0 : index
    %98 = vector.load %arg12[%c0_88, %c0_89, %c0_90] : memref<4x1x64xf32, #tpu.memory_space<vmem>>, vector<1x1x64xf32>
    %99 = vector.shape_cast %98 : vector<1x1x64xf32> to vector<1x64xf32>
    %100 = vector.broadcast %99 : vector<1x64xf32> to vector<16x64xf32>
    %101 = arith.addf %97, %100 : vector<16x64xf32>
    %102 = vector.extract_strided_slice %101 {offsets = [0, 0], sizes = [16, 32], strides = [1, 1]} : vector<16x64xf32> to vector<16x32xf32>
    %103 = arith.addf %63, %102 : vector<16x32xf32>
    %104 = arith.mulf %103, %8 : vector<16x32xf32>
    %c2_91 = arith.constant 2 : index
    %c0_92 = arith.constant 0 : index
    %105 = vector.load %arg16[%c2_91, %c0_92] : memref<20x32xf32, #tpu.memory_space<vmem>>, vector<16x32xf32>
    tpu.vector_store %arg16[%c2_91, %c0_92], %104 {strides = array<i32>} : memref<20x32xf32, #tpu.memory_space<vmem>>, vector<16x32xf32>,
    %106 = vector.extract_strided_slice %101 {offsets = [0, 32], sizes = [16, 32], strides = [1, 1]} : vector<16x64xf32> to vector<16x32xf32>
    %c0_93 = arith.constant 0 : index
    %c0_94 = arith.constant 0 : index
    %107 = vector.load %arg18[%c0_93, %c0_94] : memref<16x32xf32, #tpu.memory_space<vmem>>, vector<16x32xf32>
    tpu.vector_store %arg18[%c0_93, %c0_94], %106 {strides = array<i32>} : memref<16x32xf32, #tpu.memory_space<vmem>>, vector<16x32xf32>,
    %c2_95 = arith.constant 2 : index
    %c0_96 = arith.constant 0 : index
    %108 = vector.load %arg16[%c2_95, %c0_96] : memref<20x32xf32, #tpu.memory_space<vmem>>, vector<16x32xf32>
    %c0_97 = arith.constant 0 : index
    %c0_98 = arith.constant 0 : index
    %109 = vector.load %arg16[%c0_97, %c0_98] : memref<20x32xf32, #tpu.memory_space<vmem>>, vector<16x32xf32>
    %110 = arith.truncf %109 : vector<16x32xf32> to vector<16x32xbf16>
    %c0_99 = arith.constant 0 : index
    %c0_100 = arith.constant 0 : index
    %111 = vector.load %arg17[%c0_99, %c0_100] : memref<16x160xbf16, #tpu.memory_space<vmem>>, vector<16x32xbf16>
    tpu.vector_store %arg17[%c0_99, %c0_100], %110 {strides = array<i32>} : memref<16x160xbf16, #tpu.memory_space<vmem>>, vector<16x32xbf16>,
    %c1_101 = arith.constant 1 : index
    %c0_102 = arith.constant 0 : index
    %112 = vector.load %arg16[%c1_101, %c0_102] : memref<20x32xf32, #tpu.memory_space<vmem>>, vector<16x32xf32>
    %113 = arith.truncf %112 : vector<16x32xf32> to vector<16x32xbf16>
    %c0_103 = arith.constant 0 : index
    %c32_104 = arith.constant 32 : index
    %114 = vector.load %arg17[%c0_103, %c32_104] : memref<16x160xbf16, #tpu.memory_space<vmem>>, vector<16x32xbf16>
    tpu.vector_store %arg17[%c0_103, %c32_104], %113 {strides = array<i32>} : memref<16x160xbf16, #tpu.memory_space<vmem>>, vector<16x32xbf16>,
    %115 = arith.truncf %108 : vector<16x32xf32> to vector<16x32xbf16>
    %c0_105 = arith.constant 0 : index
    %c64_106 = arith.constant 64 : index
    %116 = vector.load %arg17[%c0_105, %c64_106] : memref<16x160xbf16, #tpu.memory_space<vmem>>, vector<16x32xbf16>
    tpu.vector_store %arg17[%c0_105, %c64_106], %115 {strides = array<i32>} : memref<16x160xbf16, #tpu.memory_space<vmem>>, vector<16x32xbf16>,
    %c3_107 = arith.constant 3 : index
    %c0_108 = arith.constant 0 : index
    %117 = vector.load %arg16[%c3_107, %c0_108] : memref<20x32xf32, #tpu.memory_space<vmem>>, vector<16x32xf32>
    %118 = arith.truncf %117 : vector<16x32xf32> to vector<16x32xbf16>
    %c0_109 = arith.constant 0 : index
    %c96_110 = arith.constant 96 : index
    %119 = vector.load %arg17[%c0_109, %c96_110] : memref<16x160xbf16, #tpu.memory_space<vmem>>, vector<16x32xbf16>
    tpu.vector_store %arg17[%c0_109, %c96_110], %118 {strides = array<i32>} : memref<16x160xbf16, #tpu.memory_space<vmem>>, vector<16x32xbf16>,
    %c4_111 = arith.constant 4 : index
    %c0_112 = arith.constant 0 : index
    %120 = vector.load %arg16[%c4_111, %c0_112] : memref<20x32xf32, #tpu.memory_space<vmem>>, vector<16x32xf32>
    %121 = arith.truncf %120 : vector<16x32xf32> to vector<16x32xbf16>
    %c0_113 = arith.constant 0 : index
    %c128_114 = arith.constant 128 : index
    %122 = vector.load %arg17[%c0_113, %c128_114] : memref<16x160xbf16, #tpu.memory_space<vmem>>, vector<16x32xbf16>
    tpu.vector_store %arg17[%c0_113, %c128_114], %121 {strides = array<i32>} : memref<16x160xbf16, #tpu.memory_space<vmem>>, vector<16x32xbf16>,
    %c0_115 = arith.constant 0 : index
    %c0_116 = arith.constant 0 : index
    %123 = vector.load %arg17[%c0_115, %c0_116] : memref<16x160xbf16, #tpu.memory_space<vmem>>, vector<16x160xbf16>
    %c1_117 = arith.constant 1 : index
    %c0_118 = arith.constant 0 : index
    %c0_119 = arith.constant 0 : index
    %124 = vector.load %arg7[%c1_117, %c0_118, %c0_119] : memref<4x160x64xbf16, #tpu.memory_space<vmem>>, vector<1x160x64xbf16>
    %125 = vector.shape_cast %124 : vector<1x160x64xbf16> to vector<160x64xbf16>
    %cst_120 = arith.constant dense<0.000000e+00> : vector<16x64xf32>
    %126 = tpu.matmul %123, %125, %cst_120 {dimension_numbers = #tpu.dot_dimension_numbers<[1], [0], [0], [1], [0, 0, 1, 1], [], []>} : vector<16x160xbf16>, vector<160x64xbf16>, vector<16x64xf32> -> vector<16x64xf32>
    %c1_121 = arith.constant 1 : index
    %c0_122 = arith.constant 0 : index
    %127 = vector.load %arg19[%c1_121, %c0_122] : memref<4x64xf32, #tpu.memory_space<vmem>>, vector<1x64xf32>
    %128 = vector.broadcast %127 : vector<1x64xf32> to vector<16x64xf32>
    %129 = arith.addf %126, %128 : vector<16x64xf32>
    %130 = vector.extract_strided_slice %129 {offsets = [0, 0], sizes = [16, 32], strides = [1, 1]} : vector<16x64xf32> to vector<16x32xf32>
    %131 = math.tanh %130 : vector<16x32xf32>
    %132 = vector.extract_strided_slice %129 {offsets = [0, 32], sizes = [16, 32], strides = [1, 1]} : vector<16x64xf32> to vector<16x32xf32>
    %133 = arith.negf %132 : vector<16x32xf32>
    %134 = math.exp %133 : vector<16x32xf32>
    %cst_123 = arith.constant 1.000000e+00 : f32
    %135 = vector.broadcast %cst_123 : f32 to vector<16x32xf32>
    %136 = arith.addf %135, %134 : vector<16x32xf32>
    %137 = arith.divf %135, %136 : vector<16x32xf32>
    %138 = arith.mulf %131, %137 : vector<16x32xf32>
    %139 = arith.truncf %138 : vector<16x32xf32> to vector<16x32xbf16>
    %c1_124 = arith.constant 1 : index
    %c0_125 = arith.constant 0 : index
    %c0_126 = arith.constant 0 : index
    %140 = vector.load %arg11[%c1_124, %c0_125, %c0_126] : memref<4x32x64xbf16, #tpu.memory_space<vmem>>, vector<1x32x64xbf16>
    %141 = vector.shape_cast %140 : vector<1x32x64xbf16> to vector<32x64xbf16>
    %cst_127 = arith.constant dense<0.000000e+00> : vector<16x64xf32>
    %142 = tpu.matmul %139, %141, %cst_127 {dimension_numbers = #tpu.dot_dimension_numbers<[1], [0], [0], [1], [0, 0, 1, 1], [], []>} : vector<16x32xbf16>, vector<32x64xbf16>, vector<16x64xf32> -> vector<16x64xf32>
    %c1_128 = arith.constant 1 : index
    %c0_129 = arith.constant 0 : index
    %c0_130 = arith.constant 0 : index
    %143 = vector.load %arg12[%c1_128, %c0_129, %c0_130] : memref<4x1x64xf32, #tpu.memory_space<vmem>>, vector<1x1x64xf32>
    %144 = vector.shape_cast %143 : vector<1x1x64xf32> to vector<1x64xf32>
    %145 = vector.broadcast %144 : vector<1x64xf32> to vector<16x64xf32>
    %146 = arith.addf %142, %145 : vector<16x64xf32>
    %147 = vector.extract_strided_slice %146 {offsets = [0, 0], sizes = [16, 32], strides = [1, 1]} : vector<16x64xf32> to vector<16x32xf32>
    %148 = arith.addf %108, %147 : vector<16x32xf32>
    %149 = arith.mulf %148, %8 : vector<16x32xf32>
    %c2_131 = arith.constant 2 : index
    %c0_132 = arith.constant 0 : index
    %150 = vector.load %arg16[%c2_131, %c0_132] : memref<20x32xf32, #tpu.memory_space<vmem>>, vector<16x32xf32>
    tpu.vector_store %arg16[%c2_131, %c0_132], %149 {strides = array<i32>} : memref<20x32xf32, #tpu.memory_space<vmem>>, vector<16x32xf32>,
    %c0_133 = arith.constant 0 : index
    %c0_134 = arith.constant 0 : index
    %151 = vector.load %arg18[%c0_133, %c0_134] : memref<16x32xf32, #tpu.memory_space<vmem>>, vector<16x32xf32>
    %152 = vector.extract_strided_slice %146 {offsets = [0, 32], sizes = [16, 32], strides = [1, 1]} : vector<16x64xf32> to vector<16x32xf32>
    %153 = arith.addf %151, %152 : vector<16x32xf32>
    %c0_135 = arith.constant 0 : index
    %c0_136 = arith.constant 0 : index
    %154 = vector.load %arg18[%c0_135, %c0_136] : memref<16x32xf32, #tpu.memory_space<vmem>>, vector<16x32xf32>
    tpu.vector_store %arg18[%c0_135, %c0_136], %153 {strides = array<i32>} : memref<16x32xf32, #tpu.memory_space<vmem>>, vector<16x32xf32>,
    %c2_137 = arith.constant 2 : index
    %c0_138 = arith.constant 0 : index
    %155 = vector.load %arg16[%c2_137, %c0_138] : memref<20x32xf32, #tpu.memory_space<vmem>>, vector<16x32xf32>
    %c0_139 = arith.constant 0 : index
    %c0_140 = arith.constant 0 : index
    %156 = vector.load %arg16[%c0_139, %c0_140] : memref<20x32xf32, #tpu.memory_space<vmem>>, vector<16x32xf32>
    %157 = arith.truncf %156 : vector<16x32xf32> to vector<16x32xbf16>
    %c0_141 = arith.constant 0 : index
    %c0_142 = arith.constant 0 : index
    %158 = vector.load %arg17[%c0_141, %c0_142] : memref<16x160xbf16, #tpu.memory_space<vmem>>, vector<16x32xbf16>
    tpu.vector_store %arg17[%c0_141, %c0_142], %157 {strides = array<i32>} : memref<16x160xbf16, #tpu.memory_space<vmem>>, vector<16x32xbf16>,
    %c1_143 = arith.constant 1 : index
    %c0_144 = arith.constant 0 : index
    %159 = vector.load %arg16[%c1_143, %c0_144] : memref<20x32xf32, #tpu.memory_space<vmem>>, vector<16x32xf32>
    %160 = arith.truncf %159 : vector<16x32xf32> to vector<16x32xbf16>
    %c0_145 = arith.constant 0 : index
    %c32_146 = arith.constant 32 : index
    %161 = vector.load %arg17[%c0_145, %c32_146] : memref<16x160xbf16, #tpu.memory_space<vmem>>, vector<16x32xbf16>
    tpu.vector_store %arg17[%c0_145, %c32_146], %160 {strides = array<i32>} : memref<16x160xbf16, #tpu.memory_space<vmem>>, vector<16x32xbf16>,
    %162 = arith.truncf %155 : vector<16x32xf32> to vector<16x32xbf16>
    %c0_147 = arith.constant 0 : index
    %c64_148 = arith.constant 64 : index
    %163 = vector.load %arg17[%c0_147, %c64_148] : memref<16x160xbf16, #tpu.memory_space<vmem>>, vector<16x32xbf16>
    tpu.vector_store %arg17[%c0_147, %c64_148], %162 {strides = array<i32>} : memref<16x160xbf16, #tpu.memory_space<vmem>>, vector<16x32xbf16>,
    %c3_149 = arith.constant 3 : index
    %c0_150 = arith.constant 0 : index
    %164 = vector.load %arg16[%c3_149, %c0_150] : memref<20x32xf32, #tpu.memory_space<vmem>>, vector<16x32xf32>
    %165 = arith.truncf %164 : vector<16x32xf32> to vector<16x32xbf16>
    %c0_151 = arith.constant 0 : index
    %c96_152 = arith.constant 96 : index
    %166 = vector.load %arg17[%c0_151, %c96_152] : memref<16x160xbf16, #tpu.memory_space<vmem>>, vector<16x32xbf16>
    tpu.vector_store %arg17[%c0_151, %c96_152], %165 {strides = array<i32>} : memref<16x160xbf16, #tpu.memory_space<vmem>>, vector<16x32xbf16>,
    %c4_153 = arith.constant 4 : index
    %c0_154 = arith.constant 0 : index
    %167 = vector.load %arg16[%c4_153, %c0_154] : memref<20x32xf32, #tpu.memory_space<vmem>>, vector<16x32xf32>
    %168 = arith.truncf %167 : vector<16x32xf32> to vector<16x32xbf16>
    %c0_155 = arith.constant 0 : index
    %c128_156 = arith.constant 128 : index
    %169 = vector.load %arg17[%c0_155, %c128_156] : memref<16x160xbf16, #tpu.memory_space<vmem>>, vector<16x32xbf16>
    tpu.vector_store %arg17[%c0_155, %c128_156], %168 {strides = array<i32>} : memref<16x160xbf16, #tpu.memory_space<vmem>>, vector<16x32xbf16>,
    %c0_157 = arith.constant 0 : index
    %c0_158 = arith.constant 0 : index
    %170 = vector.load %arg17[%c0_157, %c0_158] : memref<16x160xbf16, #tpu.memory_space<vmem>>, vector<16x160xbf16>
    %c2_159 = arith.constant 2 : index
    %c0_160 = arith.constant 0 : index
    %c0_161 = arith.constant 0 : index
    %171 = vector.load %arg7[%c2_159, %c0_160, %c0_161] : memref<4x160x64xbf16, #tpu.memory_space<vmem>>, vector<1x160x64xbf16>
    %172 = vector.shape_cast %171 : vector<1x160x64xbf16> to vector<160x64xbf16>
    %cst_162 = arith.constant dense<0.000000e+00> : vector<16x64xf32>
    %173 = tpu.matmul %170, %172, %cst_162 {dimension_numbers = #tpu.dot_dimension_numbers<[1], [0], [0], [1], [0, 0, 1, 1], [], []>} : vector<16x160xbf16>, vector<160x64xbf16>, vector<16x64xf32> -> vector<16x64xf32>
    %c2_163 = arith.constant 2 : index
    %c0_164 = arith.constant 0 : index
    %174 = vector.load %arg19[%c2_163, %c0_164] : memref<4x64xf32, #tpu.memory_space<vmem>>, vector<1x64xf32>
    %175 = vector.broadcast %174 : vector<1x64xf32> to vector<16x64xf32>
    %176 = arith.addf %173, %175 : vector<16x64xf32>
    %177 = vector.extract_strided_slice %176 {offsets = [0, 0], sizes = [16, 32], strides = [1, 1]} : vector<16x64xf32> to vector<16x32xf32>
    %178 = math.tanh %177 : vector<16x32xf32>
    %179 = vector.extract_strided_slice %176 {offsets = [0, 32], sizes = [16, 32], strides = [1, 1]} : vector<16x64xf32> to vector<16x32xf32>
    %180 = arith.negf %179 : vector<16x32xf32>
    %181 = math.exp %180 : vector<16x32xf32>
    %cst_165 = arith.constant 1.000000e+00 : f32
    %182 = vector.broadcast %cst_165 : f32 to vector<16x32xf32>
    %183 = arith.addf %182, %181 : vector<16x32xf32>
    %184 = arith.divf %182, %183 : vector<16x32xf32>
    %185 = arith.mulf %178, %184 : vector<16x32xf32>
    %186 = arith.truncf %185 : vector<16x32xf32> to vector<16x32xbf16>
    %c2_166 = arith.constant 2 : index
    %c0_167 = arith.constant 0 : index
    %c0_168 = arith.constant 0 : index
    %187 = vector.load %arg11[%c2_166, %c0_167, %c0_168] : memref<4x32x64xbf16, #tpu.memory_space<vmem>>, vector<1x32x64xbf16>
    %188 = vector.shape_cast %187 : vector<1x32x64xbf16> to vector<32x64xbf16>
    %cst_169 = arith.constant dense<0.000000e+00> : vector<16x64xf32>
    %189 = tpu.matmul %186, %188, %cst_169 {dimension_numbers = #tpu.dot_dimension_numbers<[1], [0], [0], [1], [0, 0, 1, 1], [], []>} : vector<16x32xbf16>, vector<32x64xbf16>, vector<16x64xf32> -> vector<16x64xf32>
    %c2_170 = arith.constant 2 : index
    %c0_171 = arith.constant 0 : index
    %c0_172 = arith.constant 0 : index
    %190 = vector.load %arg12[%c2_170, %c0_171, %c0_172] : memref<4x1x64xf32, #tpu.memory_space<vmem>>, vector<1x1x64xf32>
    %191 = vector.shape_cast %190 : vector<1x1x64xf32> to vector<1x64xf32>
    %192 = vector.broadcast %191 : vector<1x64xf32> to vector<16x64xf32>
    %193 = arith.addf %189, %192 : vector<16x64xf32>
    %194 = vector.extract_strided_slice %193 {offsets = [0, 0], sizes = [16, 32], strides = [1, 1]} : vector<16x64xf32> to vector<16x32xf32>
    %195 = arith.addf %155, %194 : vector<16x32xf32>
    %196 = arith.mulf %195, %8 : vector<16x32xf32>
    %c2_173 = arith.constant 2 : index
    %c0_174 = arith.constant 0 : index
    %197 = vector.load %arg16[%c2_173, %c0_174] : memref<20x32xf32, #tpu.memory_space<vmem>>, vector<16x32xf32>
    tpu.vector_store %arg16[%c2_173, %c0_174], %196 {strides = array<i32>} : memref<20x32xf32, #tpu.memory_space<vmem>>, vector<16x32xf32>,
    %c0_175 = arith.constant 0 : index
    %c0_176 = arith.constant 0 : index
    %198 = vector.load %arg18[%c0_175, %c0_176] : memref<16x32xf32, #tpu.memory_space<vmem>>, vector<16x32xf32>
    %199 = vector.extract_strided_slice %193 {offsets = [0, 32], sizes = [16, 32], strides = [1, 1]} : vector<16x64xf32> to vector<16x32xf32>
    %200 = arith.addf %198, %199 : vector<16x32xf32>
    %c0_177 = arith.constant 0 : index
    %c0_178 = arith.constant 0 : index
    %201 = vector.load %arg18[%c0_177, %c0_178] : memref<16x32xf32, #tpu.memory_space<vmem>>, vector<16x32xf32>
    tpu.vector_store %arg18[%c0_177, %c0_178], %200 {strides = array<i32>} : memref<16x32xf32, #tpu.memory_space<vmem>>, vector<16x32xf32>,
    %c2_179 = arith.constant 2 : index
    %c0_180 = arith.constant 0 : index
    %202 = vector.load %arg16[%c2_179, %c0_180] : memref<20x32xf32, #tpu.memory_space<vmem>>, vector<16x32xf32>
    %c0_181 = arith.constant 0 : index
    %c0_182 = arith.constant 0 : index
    %203 = vector.load %arg16[%c0_181, %c0_182] : memref<20x32xf32, #tpu.memory_space<vmem>>, vector<16x32xf32>
    %204 = arith.truncf %203 : vector<16x32xf32> to vector<16x32xbf16>
    %c0_183 = arith.constant 0 : index
    %c0_184 = arith.constant 0 : index
    %205 = vector.load %arg17[%c0_183, %c0_184] : memref<16x160xbf16, #tpu.memory_space<vmem>>, vector<16x32xbf16>
    tpu.vector_store %arg17[%c0_183, %c0_184], %204 {strides = array<i32>} : memref<16x160xbf16, #tpu.memory_space<vmem>>, vector<16x32xbf16>,
    %c1_185 = arith.constant 1 : index
    %c0_186 = arith.constant 0 : index
    %206 = vector.load %arg16[%c1_185, %c0_186] : memref<20x32xf32, #tpu.memory_space<vmem>>, vector<16x32xf32>
    %207 = arith.truncf %206 : vector<16x32xf32> to vector<16x32xbf16>
    %c0_187 = arith.constant 0 : index
    %c32_188 = arith.constant 32 : index
    %208 = vector.load %arg17[%c0_187, %c32_188] : memref<16x160xbf16, #tpu.memory_space<vmem>>, vector<16x32xbf16>
    tpu.vector_store %arg17[%c0_187, %c32_188], %207 {strides = array<i32>} : memref<16x160xbf16, #tpu.memory_space<vmem>>, vector<16x32xbf16>,
    %209 = arith.truncf %202 : vector<16x32xf32> to vector<16x32xbf16>
    %c0_189 = arith.constant 0 : index
    %c64_190 = arith.constant 64 : index
    %210 = vector.load %arg17[%c0_189, %c64_190] : memref<16x160xbf16, #tpu.memory_space<vmem>>, vector<16x32xbf16>
    tpu.vector_store %arg17[%c0_189, %c64_190], %209 {strides = array<i32>} : memref<16x160xbf16, #tpu.memory_space<vmem>>, vector<16x32xbf16>,
    %c3_191 = arith.constant 3 : index
    %c0_192 = arith.constant 0 : index
    %211 = vector.load %arg16[%c3_191, %c0_192] : memref<20x32xf32, #tpu.memory_space<vmem>>, vector<16x32xf32>
    %212 = arith.truncf %211 : vector<16x32xf32> to vector<16x32xbf16>
    %c0_193 = arith.constant 0 : index
    %c96_194 = arith.constant 96 : index
    %213 = vector.load %arg17[%c0_193, %c96_194] : memref<16x160xbf16, #tpu.memory_space<vmem>>, vector<16x32xbf16>
    tpu.vector_store %arg17[%c0_193, %c96_194], %212 {strides = array<i32>} : memref<16x160xbf16, #tpu.memory_space<vmem>>, vector<16x32xbf16>,
    %c4_195 = arith.constant 4 : index
    %c0_196 = arith.constant 0 : index
    %214 = vector.load %arg16[%c4_195, %c0_196] : memref<20x32xf32, #tpu.memory_space<vmem>>, vector<16x32xf32>
    %215 = arith.truncf %214 : vector<16x32xf32> to vector<16x32xbf16>
    %c0_197 = arith.constant 0 : index
    %c128_198 = arith.constant 128 : index
    %216 = vector.load %arg17[%c0_197, %c128_198] : memref<16x160xbf16, #tpu.memory_space<vmem>>, vector<16x32xbf16>
    tpu.vector_store %arg17[%c0_197, %c128_198], %215 {strides = array<i32>} : memref<16x160xbf16, #tpu.memory_space<vmem>>, vector<16x32xbf16>,
    %c0_199 = arith.constant 0 : index
    %c0_200 = arith.constant 0 : index
    %217 = vector.load %arg17[%c0_199, %c0_200] : memref<16x160xbf16, #tpu.memory_space<vmem>>, vector<16x160xbf16>
    %c3_201 = arith.constant 3 : index
    %c0_202 = arith.constant 0 : index
    %c0_203 = arith.constant 0 : index
    %218 = vector.load %arg7[%c3_201, %c0_202, %c0_203] : memref<4x160x64xbf16, #tpu.memory_space<vmem>>, vector<1x160x64xbf16>
    %219 = vector.shape_cast %218 : vector<1x160x64xbf16> to vector<160x64xbf16>
    %cst_204 = arith.constant dense<0.000000e+00> : vector<16x64xf32>
    %220 = tpu.matmul %217, %219, %cst_204 {dimension_numbers = #tpu.dot_dimension_numbers<[1], [0], [0], [1], [0, 0, 1, 1], [], []>} : vector<16x160xbf16>, vector<160x64xbf16>, vector<16x64xf32> -> vector<16x64xf32>
    %c3_205 = arith.constant 3 : index
    %c0_206 = arith.constant 0 : index
    %221 = vector.load %arg19[%c3_205, %c0_206] : memref<4x64xf32, #tpu.memory_space<vmem>>, vector<1x64xf32>
    %222 = vector.broadcast %221 : vector<1x64xf32> to vector<16x64xf32>
    %223 = arith.addf %220, %222 : vector<16x64xf32>
    %224 = vector.extract_strided_slice %223 {offsets = [0, 0], sizes = [16, 32], strides = [1, 1]} : vector<16x64xf32> to vector<16x32xf32>
    %225 = math.tanh %224 : vector<16x32xf32>
    %226 = vector.extract_strided_slice %223 {offsets = [0, 32], sizes = [16, 32], strides = [1, 1]} : vector<16x64xf32> to vector<16x32xf32>
    %227 = arith.negf %226 : vector<16x32xf32>
    %228 = math.exp %227 : vector<16x32xf32>
    %cst_207 = arith.constant 1.000000e+00 : f32
    %229 = vector.broadcast %cst_207 : f32 to vector<16x32xf32>
    %230 = arith.addf %229, %228 : vector<16x32xf32>
    %231 = arith.divf %229, %230 : vector<16x32xf32>
    %232 = arith.mulf %225, %231 : vector<16x32xf32>
    %233 = arith.truncf %232 : vector<16x32xf32> to vector<16x32xbf16>
    %c3_208 = arith.constant 3 : index
    %c0_209 = arith.constant 0 : index
    %c0_210 = arith.constant 0 : index
    %234 = vector.load %arg11[%c3_208, %c0_209, %c0_210] : memref<4x32x64xbf16, #tpu.memory_space<vmem>>, vector<1x32x64xbf16>
    %235 = vector.shape_cast %234 : vector<1x32x64xbf16> to vector<32x64xbf16>
    %cst_211 = arith.constant dense<0.000000e+00> : vector<16x64xf32>
    %236 = tpu.matmul %233, %235, %cst_211 {dimension_numbers = #tpu.dot_dimension_numbers<[1], [0], [0], [1], [0, 0, 1, 1], [], []>} : vector<16x32xbf16>, vector<32x64xbf16>, vector<16x64xf32> -> vector<16x64xf32>
    %c3_212 = arith.constant 3 : index
    %c0_213 = arith.constant 0 : index
    %c0_214 = arith.constant 0 : index
    %237 = vector.load %arg12[%c3_212, %c0_213, %c0_214] : memref<4x1x64xf32, #tpu.memory_space<vmem>>, vector<1x1x64xf32>
    %238 = vector.shape_cast %237 : vector<1x1x64xf32> to vector<1x64xf32>
    %239 = vector.broadcast %238 : vector<1x64xf32> to vector<16x64xf32>
    %240 = arith.addf %236, %239 : vector<16x64xf32>
    %241 = vector.extract_strided_slice %240 {offsets = [0, 0], sizes = [16, 32], strides = [1, 1]} : vector<16x64xf32> to vector<16x32xf32>
    %242 = arith.addf %202, %241 : vector<16x32xf32>
    %243 = arith.mulf %242, %8 : vector<16x32xf32>
    %c2_215 = arith.constant 2 : index
    %c0_216 = arith.constant 0 : index
    %244 = vector.load %arg16[%c2_215, %c0_216] : memref<20x32xf32, #tpu.memory_space<vmem>>, vector<16x32xf32>
    tpu.vector_store %arg16[%c2_215, %c0_216], %243 {strides = array<i32>} : memref<20x32xf32, #tpu.memory_space<vmem>>, vector<16x32xf32>,
    %c0_217 = arith.constant 0 : index
    %c0_218 = arith.constant 0 : index
    %245 = vector.load %arg18[%c0_217, %c0_218] : memref<16x32xf32, #tpu.memory_space<vmem>>, vector<16x32xf32>
    %246 = vector.extract_strided_slice %240 {offsets = [0, 32], sizes = [16, 32], strides = [1, 1]} : vector<16x64xf32> to vector<16x32xf32>
    %247 = arith.addf %245, %246 : vector<16x32xf32>
    %c0_219 = arith.constant 0 : index
    %c0_220 = arith.constant 0 : index
    %248 = vector.load %arg18[%c0_219, %c0_220] : memref<16x32xf32, #tpu.memory_space<vmem>>, vector<16x32xf32>
    tpu.vector_store %arg18[%c0_219, %c0_220], %247 {strides = array<i32>} : memref<16x32xf32, #tpu.memory_space<vmem>>, vector<16x32xf32>,
    %c0_221 = arith.constant 0 : index
    %c0_222 = arith.constant 0 : index
    %249 = vector.load %arg18[%c0_221, %c0_222] : memref<16x32xf32, #tpu.memory_space<vmem>>, vector<16x32xf32>
    %250 = arith.mulf %249, %8 : vector<16x32xf32>
    %251 = arith.truncf %250 : vector<16x32xf32> to vector<16x32xbf16>
    %c0_223 = arith.constant 0 : index
    %c0_224 = arith.constant 0 : index
    %252 = vector.load %arg13[%c0_223, %c0_224] : memref<32x16xbf16, #tpu.memory_space<vmem>>, vector<32x16xbf16>
    %cst_225 = arith.constant dense<0.000000e+00> : vector<16x16xf32>
    %253 = tpu.matmul %251, %252, %cst_225 {dimension_numbers = #tpu.dot_dimension_numbers<[1], [0], [0], [1], [0, 0, 1, 1], [], []>} : vector<16x32xbf16>, vector<32x16xbf16>, vector<16x16xf32> -> vector<16x16xf32>
    %c0_226 = arith.constant 0 : index
    %c0_227 = arith.constant 0 : index
    %254 = vector.load %arg14[%c0_226, %c0_227] : memref<1x16xf32, #tpu.memory_space<vmem>>, vector<1x16xf32>
    %255 = vector.broadcast %254 : vector<1x16xf32> to vector<16x16xf32>
    %256 = arith.addf %253, %255 : vector<16x16xf32>
    %257 = vector.broadcast %6 : vector<16x1xf32> to vector<16x16xf32>
    %258 = arith.mulf %256, %257 : vector<16x16xf32>
    %259 = vector.extract_strided_slice %258 {offsets = [0, 0], sizes = [16, 8], strides = [1, 1]} : vector<16x16xf32> to vector<16x8xf32>
    %260 = vector.extract_strided_slice %258 {offsets = [0, 8], sizes = [16, 8], strides = [1, 1]} : vector<16x16xf32> to vector<16x8xf32>
    %c0_228 = arith.constant 0 : index
    %c0_229 = arith.constant 0 : index
    %c0_230 = arith.constant 0 : index
    %261 = vector.load %arg4[%c0_228, %c0_229, %c0_230] : memref<1x16x8xbf16, #tpu.memory_space<vmem>>, vector<1x16x8xbf16>
    %262 = vector.shape_cast %261 : vector<1x16x8xbf16> to vector<16x8xbf16>
    %263 = arith.extf %262 : vector<16x8xbf16> to vector<16x8xf32>
    %264 = math.exp %260 : vector<16x8xf32>
    %265 = arith.mulf %263, %264 : vector<16x8xf32>
    %266 = arith.addf %259, %265 : vector<16x8xf32>
    %267 = vector.broadcast %6 : vector<16x1xf32> to vector<16x8xf32>
    %268 = arith.mulf %266, %267 : vector<16x8xf32>
    %c0_231 = arith.constant 0 : index
    %c0_232 = arith.constant 0 : index
    %c0_233 = arith.constant 0 : index
    %269 = vector.load %arg15[%c0_231, %c0_232, %c0_233] : memref<1x16x24xf32, #tpu.memory_space<vmem>>, vector<1x16x16xf32>
    %270 = vector.shape_cast %269 : vector<1x16x16xf32> to vector<16x16xf32>
    %271 = vector.shape_cast %258 : vector<16x16xf32> to vector<1x16x16xf32>
    tpu.vector_store %arg15[%c0_231, %c0_232, %c0_233], %271 {strides = array<i32>} : memref<1x16x24xf32, #tpu.memory_space<vmem>>, vector<1x16x16xf32>,
    %c0_234 = arith.constant 0 : index
    %c0_235 = arith.constant 0 : index
    %c16 = arith.constant 16 : index
    %272 = vector.load %arg15[%c0_234, %c0_235, %c16] : memref<1x16x24xf32, #tpu.memory_space<vmem>>, vector<1x16x8xf32>
    %273 = vector.shape_cast %272 : vector<1x16x8xf32> to vector<16x8xf32>
    %274 = vector.shape_cast %268 : vector<16x8xf32> to vector<1x16x8xf32>
    tpu.vector_store %arg15[%c0_234, %c0_235, %c16], %274 {strides = array<i32>} : memref<1x16x24xf32, #tpu.memory_space<vmem>>, vector<1x16x8xf32>,
    return
  }
  func.func @transform_0(%arg0: i32, %arg1: memref<2xi32, #tpu.memory_space<smem>>) -> (i32, i32, i32) {
    %c0_i32 = arith.constant 0 : i32
    %c0_i32_0 = arith.constant 0 : i32
    %c0_i32_1 = arith.constant 0 : i32
    return %arg0, %c0_i32, %c0_i32_0 : i32, i32, i32
  }
  func.func @transform_1(%arg0: i32, %arg1: memref<2xi32, #tpu.memory_space<smem>>) -> (i32, i32, i32) {
    %c0_i32 = arith.constant 0 : i32
    %c0_i32_0 = arith.constant 0 : i32
    %c0_i32_1 = arith.constant 0 : i32
    return %arg0, %c0_i32, %c0_i32_0 : i32, i32, i32
  }
  func.func @transform_2(%arg0: i32, %arg1: memref<2xi32, #tpu.memory_space<smem>>) -> (i32, i32, i32) {
    %c0_i32 = arith.constant 0 : i32
    %c0_i32_0 = arith.constant 0 : i32
    %c0_i32_1 = arith.constant 0 : i32
    return %arg0, %c0_i32, %c0_i32_0 : i32, i32, i32
  }
  func.func @transform_3(%arg0: i32, %arg1: memref<2xi32, #tpu.memory_space<smem>>) -> (i32, i32) {
    %c0_i32 = arith.constant 0 : i32
    %c0_i32_0 = arith.constant 0 : i32
    %c0_i32_1 = arith.constant 0 : i32
    return %c0_i32, %c0_i32_0 : i32, i32
  }
  func.func @transform_4(%arg0: i32, %arg1: memref<2xi32, #tpu.memory_space<smem>>) -> (i32, i32) {
    %c0_i32 = arith.constant 0 : i32
    %c0_i32_0 = arith.constant 0 : i32
    %c0_i32_1 = arith.constant 0 : i32
    return %c0_i32, %c0_i32_0 : i32, i32
  }
  func.func @transform_5(%arg0: i32, %arg1: memref<2xi32, #tpu.memory_space<smem>>) -> (i32, i32, i32) {
    %c0_i32 = arith.constant 0 : i32
    %c0_i32_0 = arith.constant 0 : i32
    %c0_i32_1 = arith.constant 0 : i32
    %c0_i32_2 = arith.constant 0 : i32
    return %c0_i32, %c0_i32_0, %c0_i32_1 : i32, i32, i32
  }
  func.func @transform_6(%arg0: i32, %arg1: memref<2xi32, #tpu.memory_space<smem>>) -> (i32, i32, i32) {
    %c0_i32 = arith.constant 0 : i32
    %c0_i32_0 = arith.constant 0 : i32
    %c0_i32_1 = arith.constant 0 : i32
    %c0_i32_2 = arith.constant 0 : i32
    return %c0_i32, %c0_i32_0, %c0_i32_1 : i32, i32, i32
  }
  func.func @transform_7(%arg0: i32, %arg1: memref<2xi32, #tpu.memory_space<smem>>) -> (i32, i32, i32) {
    %c0_i32 = arith.constant 0 : i32
    %c0_i32_0 = arith.constant 0 : i32
    %c0_i32_1 = arith.constant 0 : i32
    %c0_i32_2 = arith.constant 0 : i32
    return %c0_i32, %c0_i32_0, %c0_i32_1 : i32, i32, i32
  }
  func.func @transform_8(%arg0: i32, %arg1: memref<2xi32, #tpu.memory_space<smem>>) -> (i32, i32, i32) {
    %c0_i32 = arith.constant 0 : i32
    %c0_i32_0 = arith.constant 0 : i32
    %c0_i32_1 = arith.constant 0 : i32
    %c0_i32_2 = arith.constant 0 : i32
    return %c0_i32, %c0_i32_0, %c0_i32_1 : i32, i32, i32
  }
  func.func @transform_9(%arg0: i32, %arg1: memref<2xi32, #tpu.memory_space<smem>>) -> (i32, i32, i32) {
    %c0_i32 = arith.constant 0 : i32
    %c0_i32_0 = arith.constant 0 : i32
    %c0_i32_1 = arith.constant 0 : i32
    %c0_i32_2 = arith.constant 0 : i32
    return %c0_i32, %c0_i32_0, %c0_i32_1 : i32, i32, i32
  }
  func.func @transform_10(%arg0: i32, %arg1: memref<2xi32, #tpu.memory_space<smem>>) -> (i32, i32, i32) {
    %c0_i32 = arith.constant 0 : i32
    %c0_i32_0 = arith.constant 0 : i32
    %c0_i32_1 = arith.constant 0 : i32
    %c0_i32_2 = arith.constant 0 : i32
    return %c0_i32, %c0_i32_0, %c0_i32_1 : i32, i32, i32
  }
  func.func @transform_11(%arg0: i32, %arg1: memref<2xi32, #tpu.memory_space<smem>>) -> (i32, i32) {
    %c0_i32 = arith.constant 0 : i32
    %c0_i32_0 = arith.constant 0 : i32
    %c0_i32_1 = arith.constant 0 : i32
    return %c0_i32, %c0_i32_0 : i32, i32
  }
  func.func @transform_12(%arg0: i32, %arg1: memref<2xi32, #tpu.memory_space<smem>>) -> (i32, i32) {
    %c0_i32 = arith.constant 0 : i32
    %c0_i32_0 = arith.constant 0 : i32
    %c0_i32_1 = arith.constant 0 : i32
    return %c0_i32, %c0_i32_0 : i32, i32
  }
  func.func @transform_13(%arg0: i32, %arg1: memref<2xi32, #tpu.memory_space<smem>>) -> (i32, i32, i32) {
    %c0_i32 = arith.constant 0 : i32
    %c0_i32_0 = arith.constant 0 : i32
    %c0_i32_1 = arith.constant 0 : i32
    return %arg0, %c0_i32, %c0_i32_0 : i32, i32, i32
  }
}

</mosaic_0001>

<bundles_post_ra>
// kernel: tpu_custom_call.1
= control target key start
LH: loop header
LB: loop body
LE: loop exit
PB: predicated region body
PF: predicated region fallthrough
CT: control target
= control target key end

     0   :  { %s3299_s0 = inlined_call_operand.vmem [shape: s32[2], index: 0, kind: input, shape index: {}]   ;;  %s3300_s1 = inlined_call_operand.vmem [shape: bf16[2,16,16], index: 1, kind: input, shape index: {}]   ;;  %s3301_s2 = inlined_call_operand.vmem [shape: bf16[2,1,16], index: 2, kind: input, shape index: {}]   ;;  %s3302_s3 = inlined_call_operand.vmem [shape: bf16[2,16,8], index: 3, kind: input, shape index: {}]   ;;  %s3303_s4 = inlined_call_operand.vmem [shape: bf16[16,32], index: 4, kind: input, shape index: {}]   ;;  %s3304_s5 = inlined_call_operand.vmem [shape: f32[1,32], index: 5, kind: input, shape index: {}]   ;;  %s3305_s6 = inlined_call_operand.vmem [shape: bf16[4,160,64], index: 6, kind: input, shape index: {}]   ;;  %s3306_s7 = inlined_call_operand.vmem [shape: f32[4,1,64], index: 7, kind: input, shape index: {}]   ;;  %s3307_s8 = inlined_call_operand.vmem [shape: bf16[4,16,64], index: 8, kind: input, shape index: {}]   ;;  %s3308_s9 = inlined_call_operand.vmem [shape: f32[4,1,64], index: 9, kind: input, shape index: {}]   ;;  %s3309_s10 = inlined_call_operand.vmem [shape: bf16[4,32,64], index: 10, kind: input, shape index: {}]   ;;  %s3310_s11 = inlined_call_operand.vmem [shape: f32[4,1,64], index: 11, kind: input, shape index: {}]   ;;  %s3311_s12 = inlined_call_operand.vmem [shape: bf16[32,16], index: 12, kind: input, shape index: {}]   ;;  %s3312_s13 = inlined_call_operand.vmem [shape: f32[1,16], index: 13, kind: input, shape index: {}]   ;;  %s3313_s14 = inlined_call_operand.hbm [shape: f32[2,16,24], index: 14, kind: output, shape index: {}]  }
   0x1   :  { %3322 = sst [smem:[#allocation14_spill]] %s3300_s1  ;;  %s19_s15 = sshll.u32 %s3299_s0, 4  ;;  %s20_s15 = int_to_ptr.vmem [resolvable:$true] %s19_s15 }
   0x2   :  { %3323 = sst [smem:[#allocation15_spill]] %s3301_s2  ;;  %s2554_s16 = scalar_lea.vmem %s20_s15, 16 }
   0x3   :  { %p2555_p0 = scmp.ne.s32.totalorder %s20_s15, %s2554_s16  ;;  %p2559_p1 = scmp.lt.s32.totalorder %s20_s15, %s20_s15 }
   0x4   :  { %p2560_p2 = scmp.lt.s32.totalorder %s2554_s16, %s2554_s16 }
   0x6   :  { %p2561_p3 = por %p2560_p2, %p2559_p1 }
   0x8   :  { %p2562_p4 = pnand %p2561_p3, %p2555_p0 }
   0xa   :  { %2565 = shalt.err (!%p2562_p4)  }
   0xb   :  { %s2632_s17 = smov [#allocation7]  }
   0xc   :  { %22 = dma.vmem_to_smem %s20_s15, 16, %s2632_s17, [#allocation6] }
   0xd   :  { %2610 = dma.done.wait [#allocation6], 16 }
   0xe   :  { %2611 = vsyncadd [#allocation6], 4294967280 }
   0xf   :  { %24 = sfence }
  0x10   :  { %25 = vsyncpa [#allocation9], 0 }
  0x11   :  { %27 = vsyncpa [#allocation9 + $0x1], 0  ;;  %s2722_s18 = smov 0   ;;  %s2724_s19 = smov 0  }
  0x12   :  { %s2726_s0 = smov 0   ;;  %s2728_s20 = smov 0  }
  0x13 LB: > { %3324 = sst [smem:[#allocation12_spill]] %s2626_s0  ;;  %s2743_s21 = sadd.s32 4294967295, %s2630_s20   ;;  %s2630_s20 = sphi %s2728_s20, %s3338_s20   ;;  %s2626_s0 = sphi %s2726_s0, %s3335_s0   ;;  %s2622_s19 = sphi %s2724_s19, %s3337_s19   ;;  %s2618_s18 = sphi %s2722_s18, %s3336_s18  }
  0x14   : > { %s2103_s22 = sadd.s32 4294967294, %s2630_s20   ;;  %s2747_s23 = sadd.s32 1, %s2630_s20  }
  0x15   : > { %s328_s24 = sadd.s32 1, %s2626_s0  ;;  %s325_s25 = ssub.s32 %s2630_s20, %s2747_s23 }
  0x16   : > { %p338_p5 = scmp.ne.s32.totalorder %s2626_s0, %s2622_s19  ;;  %p326_p6 = scmp.eq.s32.totalorder %s325_s25, 0 }
  0x17   : > { %p339_p7 = scmp.eq.s32.totalorder %s2743_s21, 1  ;;  %p344_p8 = scmp.ne.s32.totalorder %s2622_s19, %s2618_s18 }
  0x18   : > { %p345_p9 = scmp.eq.s32.totalorder %s2103_s22, 1  ;;  %p2106_p12 = scmp.ge.s32.totalorder %s2630_s20, 1 }
  0x19   : > { %s2758_s26 = scalar_select %p326_p6, %s2626_s0, %s328_s24  }
  0x1a   : > { %p2760_p10 = por %p339_p7, %p338_p5  ;;  %p2764_p11 = por %p345_p9, %p344_p8 }
  0x1b   : > { %3325 = sst [smem:[#allocation13_spill]] %s2758_s26  ;;  %p415_p13 = scmp.lt.s32.totalorder %s2630_s20, 3 }
  0x1d   : > { %p416_p0 = pnand %p2106_p12, %p415_p13 }
  0x1e   : > { %v2446_v0 = vld [vmem:[%s3307_s8] sm:$0xff] (!%p416_p0)   ;;  %v2633_v1 = vmov (!%p416_p0), 0.0   ;;  %p467_p1 = scmp.lt.s32.totalorder (!%p416_p0), %s2743_s21, 1  ;;  %vm2634_vm0 = vmmov (!%p416_p0), 0   ;;  %vm505_vm1 = vcmask (!%p416_p0), 130048   ;;  %v2448_v2 = vld [vmem:[%s3307_s8 + $0x10] sm:$0xff] (!%p416_p0)   ;;  %v482_v24 = vlaneseq (!%p416_p0) }
  0x1f   : > { %419 = sbr.rel (%p416_p0) target bundleno = 3758 (0xeae), region = 72  ;;  %2326 = vmatprep.subr.bf16.mxu0 (!%p416_p0), %v2633_v1  ;;  %2332 = vmatprep.subr.bf16.mxu1 (!%p416_p0), %v2633_v1  ;;  %s3328_s2 = sld [smem:[#allocation15_spill]] (!%p416_p0)  ;;  %v2449_v4 = vld [vmem:[%s3303_s4] sm:$0xff] (!%p416_p0)   ;;  %vm492_vm2 = vcmask (!%p416_p0), 254976   ;;  %v2450_v6 = vld [vmem:[%s3307_s8 + $0x8] sm:$0xff] (!%p416_p0)   ;;  %v2451_v7 = vld [vmem:[%s3307_s8 + $0x18] sm:$0xff] (!%p416_p0)  }
  0x20   : > { %2327 = vmatpush3.bf16.msra.mxu0 (!%p416_p0), %v2446_v0  ;;  %2328 = vmatprep.mubr.msk.bf16.mxu0 (!%p416_p0), %vm2634_vm0, %v2633_v1  ;;  %s3329_s1 = sld [smem:[#allocation14_spill]] (!%p416_p0)  ;;  %494 = vst.msk [vmem:[#allocation2 + $0x12] sm:$0x3] (!%p416_p0), %vm492_vm2, %v2633_v1  ;;  %493 = vst.msk [vmem:[#allocation2] sm:$0x3] (!%p416_p0), %vm492_vm2, %v2633_v1  ;;  %v2452_v8 = vld [vmem:[%s3305_s6] sm:$0xff] (!%p416_p0)  }
  0x21   : > { %2338 = vmatprep.subr.bf16.mxu0 (!%p416_p0), %v2633_v1  ;;  %2334 = vmatprep.mubr.msk.bf16.mxu1 (!%p416_p0), %vm2634_vm0, %v2633_v1  ;;  %v2635_v9 = vmov (!%p416_p0), 0   ;;  %v2453_v10 = vld [vmem:[%s3305_s6 + $0x8] sm:$0xff] (!%p416_p0)   ;;  %v2454_v11 = vld [vmem:[%s3305_s6 + $0x10] sm:$0xff] (!%p416_p0)   ;;  %v2455_v12 = vld [vmem:[%s3305_s6 + $0x18] sm:$0xff] (!%p416_p0)   ;;  %vm551_vm3 = vcmask (!%p416_p0), 516096   ;;  %s481_s16 = sld [smem:[#allocation7 + %s2743_s21]] (!%p416_p0) }
  0x22   : > { %2333 = vmatpush3.bf16.msra.mxu1 (!%p416_p0), %v2450_v6  ;;  %v2456_v13 = vld [vmem:[%s3305_s6 + $0x20] sm:$0xff] (!%p416_p0)   ;;  %v2457_v14 = vld [vmem:[%s3305_s6 + $0x28] sm:$0xff] (!%p416_p0)   ;;  %v2458_v15 = vld [vmem:[%s3305_s6 + $0x30] sm:$0xff] (!%p416_p0)   ;;  %v483_v26 = vshrl.u32 (!%p416_p0), %v482_v24, 7  ;;  %vm786_vm6 = vcmask (!%p416_p0), 261120   ;;  %s3318_s25 = smov (!%p416_p0), 96  }
  0x23   : > { %2344 = vmatprep.subr.bf16.mxu1 (!%p416_p0), %v2633_v1  ;;  %v498_v16 = vld [vmem:[%s3308_s9] sm:$0x1] (!%p416_p0)  ;;  %v2124_v25 = vld [vmem:[%s3308_s9 + $0x2] sm:$0x1] (!%p416_p0)  ;;  %v2459_v47 = vld [vmem:[%s3305_s6 + $0x38] sm:$0xff] (!%p416_p0)   ;;  %s3316_s30 = smov (!%p416_p0), 64  }
  0x24   : > { %v549_v18 = vld [vmem:[%s3306_s7] sm:$0x1] (!%p416_p0)  ;;  %v2127_v28 = vld [vmem:[%s3306_s7 + $0x2] sm:$0x1] (!%p416_p0)  ;;  %v484_v35 = vadd.s32 (!%p416_p0), 8, %v483_v26  ;;  %v2461_v49 = vld [vmem:[%s3305_s6 + $0x48] sm:$0xff] (!%p416_p0)  }
  0x25   : > { %v2134_v36 = vld [vmem:[%s3304_s5] ss:$0 sm:$0xff] (!%p416_p0)  ;;  %vm802_vm7 = vcmask (!%p416_p0), 523520   ;;  %vm809_vm8 = vcmask (!%p416_p0), 785920   ;;  %vm818_vm9 = vcmask (!%p416_p0), 1048320   ;;  %s3330_s17 = smov (!%p416_p0), 64  }
  0x26   : > { %s2779_s15 = scalar_select %p467_p1, %s2743_s21, 1  ;;  %v2460_v48 = vld [vmem:[%s3305_s6 + $0x40] sm:$0xff]   ;;  %vm2003_vm10 = vcmask 195712  }
  0x27   : > { %v485_v32 = vstv %s481_s16  ;;  %v2462_v24 = vld [vmem:[%s3309_s10] sm:$0xff]   ;;  %s3331_s26 = smov 96  }
  0x28   : > { %s3315_s22 = sshll.u32 %s2779_s15, 3  ;;  %s474_s29 = scalar_lea.vmem %s3328_s2, %s2779_s15  ;;  %vm486_vm4 = vcmp.lt.s32.totalorder %v483_v26, %v485_v32  ;;  %vm487_vm5 = vcmp.lt.s32.totalorder %v484_v35, %v485_v32 }
  0x29   : > { %s471_s0 = scalar_lea.vmem %s3329_s1, %s3315_s22  ;;  %v495_v3 = vld [vmem:[%s474_s29] sm:$0x1]  ;;  %v2872_v37 = vsel %vm486_vm4, 1.0, %v2633_v1  ;;  %v2875_v41 = vsel %vm487_vm5, 1.0, %v2633_v1  ;;  %s3320_s29 = smov 32  }
  0x2a   : > { %2329 = vmatmul.mubr.msk.bf16.vlgmr.msra.gmra.mrb[0].mxu0 %vm505_vm1, %v495_v3  ;;  %v2447_v5 = vld [vmem:[%s471_s0] sm:$0xff]   ;;  %2335 = vmatmul.mubr.msk.bf16.vlgmr.msra.gmra.mrb[0].mxu1 %vm505_vm1, %v495_v3  ;;  %s2639_s0 = smov 120   ;;  %s3333_s16 = sshll.u32 %s2779_s15, 3 }
  0x2b   : > { %2339 = vmatpush3.bf16.msra.mxu0 %v2448_v2  ;;  %2340 = vmatprep.mubr.msk.bf16.mxu0 %vm2634_vm0, %v2633_v1  ;;  %s2640_s15 = smov 16   ;;  %s2296_s2 = sshll.u32 %s2743_s21, 8 }
  0x2c   : > { %2350 = vmatprep.subr.bf16.mxu0 %v2633_v1  ;;  %2346 = vmatprep.mubr.msk.bf16.mxu1 %vm2634_vm0, %v2633_v1  ;;  %s2641_s1 = smov [#allocation8]  }
  0x2d   : > { %2345 = vmatpush3.bf16.msra.mxu1 %v2451_v7  ;;  %s2570_s22 = sshll.u32 %s2641_s1, 4  ;;  %s2571_s22 = int_to_ptr.vmem [resolvable:$false] %s2570_s22 }
  0x2e   : > { %914 = vmatprep.subr.bf16.mxu1 %v2635_v9 }
  0x32   : > { %2341 = vmatmul.mubr.msk.bf16.vlgmr.msra.gmra.mrb[4].mxu0 %vm505_vm1, %v495_v3  ;;  %2347 = vmatmul.mubr.msk.bf16.vlgmr.msra.gmra.mrb[4].mxu1 %vm505_vm1, %v495_v3  ;;  %v2118_v3 = vld [vmem:[%s3308_s9 + $0x1] sm:$0x1] }
  0x33   : > { %2351 = vmatpush3.bf16.msra.mxu0 %v2449_v4  ;;  %2352 = vmatprep.mubr.msk.bf16.mxu0 %vm2634_vm0, %v2633_v1 }
  0x34   : > { %2356 = vmatprep.subr.bf16.mxu0 %v2633_v1  ;;  %915 = vmatpush1.bf16.msra.mxu1 %v2452_v8 }
  0x35   : > { %916 = vmatprep.subr.bf16.mxu1 %v2635_v9 }
  0x38   : > { %917 = vmatpush1.bf16.msra.mxu1 %v2453_v10 }
  0x39   : > { %918 = vmatprep.subr.bf16.mxu1 %v2635_v9 }
  0x3a   : > { %2353 = vmatmul.mubr.msk.bf16.vlgmr.msra.gmra.mrb[8].mxu0 %vm505_vm1, %v2447_v5  ;;  %v2121_v5 = vld [vmem:[%s3306_s7 + $0x1] sm:$0x1] }
  0x3b   : > { %2360 = vmatprep.mubr.msk.bf16.mxu0 %vm2634_vm0, %v2633_v1  ;;  %2357 = vmatpush3.bf16.msra.mxu0 %v2462_v24 }
  0x3c   : > { %919 = vmatpush1.bf16.msra.mxu1 %v2454_v11  ;;  %2358 = vmatprep.subr.bf16.mxu0 %v2633_v1 }
  0x3d   : > { %920 = vmatprep.subr.bf16.mxu1 %v2635_v9 }
  0x40   : > { %921 = vmatpush1.bf16.msra.mxu1 %v2455_v12  ;;  %v2130_v12 = vld [vmem:[%s3308_s9 + $0x3] sm:$0x1] }
  0x41   : > { %922 = vmatprep.subr.bf16.mxu1 %v2635_v9 }
  0x44   : > { %923 = vmatpush1.bf16.msra.mxu1 %v2456_v13 }
  0x45   : > { %924 = vmatprep.subr.bf16.mxu1 %v2635_v9 }
  0x48   : > { %925 = vmatpush1.bf16.msra.mxu1 %v2457_v14  ;;  %v2133_v14 = vld [vmem:[%s3306_s7 + $0x3] sm:$0x1] }
  0x49   : > { %926 = vmatprep.subr.bf16.mxu1 %v2635_v9 }
  0x4c   : > { %927 = vmatpush1.bf16.msra.mxu1 %v2458_v15 }
  0x4d   : > { %928 = vmatprep.subr.bf16.mxu1 %v2635_v9 }
  0x50   : > { %929 = vmatpush1.bf16.msra.mxu1 %v2459_v47 }
  0x51   : > { %930 = vmatprep.subr.bf16.mxu1 %v2635_v9 }
  0x54   : > { %931 = vmatpush1.bf16.msra.mxu1 %v2460_v48 }
  0x55   : > { %932 = vmatprep.subr.bf16.mxu1 %v2635_v9 }
  0x58   : > { %933 = vmatpush1.bf16.msra.mxu1 %v2461_v49 }
  0x59   : > { %2364 = vmatprep.subr.bf16.mxu1 %v2633_v1 }
  0xfd   : > { %v543_v17 = vpop.f32.mrb[0].mxu0  ;;  %v598_v4 = vpop.f32.mrb[0].mxu1 }
  0xfe   : > { %v544_v19 = vadd.f32 %v543_v17, %v498_v16  ;;  %v2330_v20 = vpop.f32.mrb[1].mxu0  ;;  %v599_v6 = vadd.f32 %v2118_v3, %v598_v4  ;;  %v2336_v7 = vpop.f32.mrb[1].mxu1 }
  0xff   : > { %v546_v21 = vpop.f32.mrb[2].mxu0  ;;  %v601_v8 = vpop.f32.mrb[2].mxu1  ;;  %v2471_v7 = vld [vmem:[%s3305_s6 + $0x88] sm:$0xff]  }
 0x100   : > { %v550_v22 = vadd.f32 %v549_v18, %v544_v19  ;;  %v2331_v23 = vpop.f32.mrb[3].mxu0  ;;  %v606_v10 = vadd.f32 %v2121_v5, %v599_v6  ;;  %v2337_v11 = vpop.f32.mrb[3].mxu1 }
 0x102   : > { %552 = vst.msk [vmem:[#allocation5] sm:$0x1] %vm551_vm3, %v550_v22  ;;  %607 = vst.msk [vmem:[#allocation5 + $0x1] sm:$0x1] %vm551_vm3, %v606_v10 }
 0x105   : > { %v653_v27 = vpop.f32.mrb[4].mxu0  ;;  %v708_v13 = vpop.f32.mrb[4].mxu1 }
 0x106   : > { %v654_v29 = vadd.f32 %v2124_v25, %v653_v27  ;;  %v2342_v30 = vpop.f32.mrb[5].mxu0  ;;  %v709_v15 = vadd.f32 %v2130_v12, %v708_v13  ;;  %v2348_v16 = vpop.f32.mrb[5].mxu1 }
 0x107   : > { %v656_v31 = vpop.f32.mrb[6].mxu0  ;;  %v711_v17 = vpop.f32.mrb[6].mxu1 }
 0x108   : > { %v661_v33 = vadd.f32 %v2127_v28, %v654_v29  ;;  %v2343_v34 = vpop.f32.mrb[7].mxu0  ;;  %v716_v18 = vadd.f32 %v2133_v14, %v709_v15  ;;  %v2349_v19 = vpop.f32.mrb[7].mxu1 }
 0x109   : > { %v2138_v25 = vld [vmem:[#allocation5] ss:$0 sm:$0xff] }
 0x10a   : > { %662 = vst.msk [vmem:[#allocation5 + $0x2] sm:$0x1] %vm551_vm3, %v661_v33  ;;  %717 = vst.msk [vmem:[#allocation5 + $0x3] sm:$0x1] %vm551_vm3, %v716_v18 }
 0x10d   : > { %v777_v38 = vpop.f32.mrb[8].mxu0 }
 0x10e   : > { %v778_v39 = vadd.f32 %v2134_v36, %v777_v38  ;;  %v2354_v40 = vpop.f32.mrb[9].mxu0 }
 0x10f   : > { %v780_v42 = vpop.f32.mrb[10].mxu0 }
 0x110   : > { %v784_v43 = vmul.f32 %v2872_v37, %v778_v39  ;;  %v781_v44 = vadd.f32 %v2134_v36, %v780_v42  ;;  %v2355_v45 = vpop.f32.mrb[11].mxu0  ;;  %v2463_v39 = vld [vmem:[%s3309_s10 + $0x8] sm:$0xff]  }
 0x111   : > { %2359 = vmatpush3.bf16.msra.mxu0 %v2463_v39 }
 0x112   : > { %787 = vst.msk [vmem:[#allocation2 + $0x2] sm:$0xff] %vm786_vm6, %v784_v43  ;;  %v785_v46 = vmul.f32 %v2875_v41, %v781_v44  ;;  %1186 = vmatprep.subr.bf16.mxu0 %v2635_v9 }
 0x114   : > { %788 = vst.msk [vmem:[#allocation2 + $0xa] sm:$0xff] %vm786_vm6, %v785_v46 }
 0x119   : > { %v795_v54 = vld [vmem:[#allocation2 + $0x1] sm:$0xff] }
 0x11a   : > { %v791_v59 = vld [vmem:[#allocation2] sm:$0xff] }
 0x11b   : > { %v820_v50 = vld [vmem:[#allocation2 + $0x4] sm:$0xff]  ;;  %v821_v51 = vld [vmem:[#allocation2 + $0xc] sm:$0xff] }
 0x11c   : > { %v811_v52 = vld [vmem:[#allocation2 + $0x3] sm:$0xff]  ;;  %v812_v53 = vld [vmem:[#allocation2 + $0xb] sm:$0xff]  ;;  %v822_v56 = vpack.c.bf16 %v821_v51, %v820_v50  ;;  %v2465_v51 = vld [vmem:[%s3305_s6 + $0x58] sm:$0xff]  }
 0x11d   : > { %v796_v55 = vld [vmem:[#allocation2 + $0x9] sm:$0xff]  ;;  %v813_v57 = vpack.c.bf16 %v812_v53, %v811_v52  ;;  %v2466_v52 = vld [vmem:[%s3305_s6 + $0x60] sm:$0xff]  }
 0x11e   : > { %v797_v58 = vpack.c.bf16 %v796_v55, %v795_v54  ;;  %v792_v60 = vld [vmem:[#allocation2 + $0x8] sm:$0xff]  ;;  %823 = vst.msk [vmem:[#allocation3 + $0x8] sm:$0xff] %vm786_vm6, %v822_v56  ;;  %v2464_v50 = vld [vmem:[%s3305_s6 + $0x50] sm:$0xff]   ;;  %v2469_v55 = vld [vmem:[%s3305_s6 + $0x78] sm:$0xff]  }
 0x11f   : > { %v2892_v61 = vld [vmem:[#allocation2 + $0xa] sm:$0xff]  ;;  %v793_v62 = vpack.c.bf16 %v792_v60, %v791_v59  ;;  %815 = vrot.lane.b32.xlu1 %v813_v57, %s3318_s25  ;;  %v2898_v63 = vld [vmem:[#allocation2 + $0x2] sm:$0xff]  ;;  %v2152_v57 = vld [vmem:[%s3310_s11] ss:$0 sm:$0xff] }
 0x120   : > { %799 = vrot.lane.b32.xlu0 %v797_v58, %s3320_s29  ;;  %v804_v0 = vpack.c.bf16 %v2892_v61, %v2898_v63  ;;  %v2467_v53 = vld [vmem:[%s3305_s6 + $0x68] sm:$0xff]   ;;  %v2468_v54 = vld [vmem:[%s3305_s6 + $0x70] sm:$0xff]   ;;  %v2470_v56 = vld [vmem:[%s3305_s6 + $0x80] sm:$0xff]  }
 0x121   : > { %794 = vst.msk [vmem:[#allocation3] sm:$0xff] %vm786_vm6, %v793_v62 }
 0x124   : > { %806 = vrot.lane.b32.xlu0 %v804_v0, %s3316_s30  ;;  %s479_s30 = scalar_lea.vmem %s3302_s3, %s3333_s16 }
 0x125   : > { %v825_v2 = vld [vmem:[#allocation3 + $0x8] sm:$0xff] }
 0x126   : > { %2149 = vmatprep.mubr.msk.bf16.mxu1 %vm786_vm6, %v825_v2 }
 0x191   : > { %v816_v22 = vpop.permute.xlu1 %815 }
 0x192   : > { %v800_v20 = vpop.permute.xlu0 %799 }
 0x193   : > { %803 = vst.msk [vmem:[#allocation3] sm:$0xff] %vm802_vm7, %v800_v20 }
 0x196   : > { %v807_v21 = vpop.permute.xlu0 %806 }
 0x197   : > { %810 = vst.msk [vmem:[#allocation3] sm:$0xff] %vm809_vm8, %v807_v21 }
 0x198   : > { %819 = vst.msk [vmem:[#allocation3] sm:$0xff] %vm818_vm9, %v816_v22 }
 0x19f   : > { %v824_v23 = vld [vmem:[#allocation3] sm:$0xff] }
 0x1a0   : > { %947 = vmatmul.mubr.bf16.vlgmr.msra.gmra.mrb[8].mxu1 %v824_v23 }
 0x1a1   : > { %2368 = vmatprep.mubr.msk.bf16.mxu1 %vm2634_vm0, %v2633_v1 }
 0x273   : > { %v948_v26 = vpop.f32.mrb[8].mxu1 }
 0x274   : > { %v949_v27 = vadd.f32 %v2138_v25, %v948_v26  ;;  %v950_v28 = vpop.f32.mrb[9].mxu1 }
 0x275   : > { %v951_v29 = vpop.f32.mrb[10].mxu1 }
 0x276   : > { %v2150_v30 = vmul.f32 -1.442695, %v949_v27  ;;  %v952_v31 = vadd.f32 %v2138_v25, %v951_v29  ;;  %v953_v32 = vpop.f32.mrb[11].mxu1  ;;  %v2474_v29 = vld [vmem:[%s3309_s10 + $0x10] sm:$0xff]  }
 0x277   : > { %2365 = vmatpush3.bf16.msra.mxu1 %v2474_v29 }
 0x278   : > { %2502 = vpow2.f32 %v2150_v30  ;;  %v2151_v33 = vmul.f32 -1.442695, %v952_v31  ;;  %2366 = vmatprep.subr.bf16.mxu1 %v2633_v1  ;;  %v2176_v30 = vld [vmem:[#allocation5 + $0x1] ss:$0 sm:$0xff] }
 0x27a   : > { %2504 = vpow2.f32 %v2151_v33 }
 0x282   : > { %v2503_v34 = vpop.eup %2502 }
 0x283   : > { %v963_v35 = vadd.f32 1.0, %v2503_v34 }
 0x284   : > { %v2505_v36 = vpop.eup %2504 }
 0x285   : > { %2506 = vrcp.f32 %v963_v35  ;;  %v964_v38 = vadd.f32 1.0, %v2505_v36 }
 0x287   : > { %2508 = vrcp.f32 %v964_v38 }
 0x288   : > { %2510 = vtanh.f32 %v949_v27 }
 0x289   : > { %2512 = vtanh.f32 %v952_v31 }
 0x28f   : > { %v2507_v40 = vpop.eup %2506 }
 0x290   : > { %971 = vrot.lane.b32.xlu1 %v2507_v40, %s3318_s25 }
 0x291   : > { %v2509_v42 = vpop.eup %2508 }
 0x292   : > { %973 = vrot.lane.b32.xlu0 %v2509_v42, %s3318_s25  ;;  %v2511_v44 = vpop.eup %2510 }
 0x293   : > { %v2513_v45 = vpop.eup %2512 }
 0x302   : > { %v972_v43 = vpop.permute.xlu1 %971 }
 0x303   : > { %v977_v47 = vmul.f32 %v2511_v44, %v972_v43 }
 0x304   : > { %v974_v46 = vpop.permute.xlu0 %973 }
 0x305   : > { %v978_v48 = vmul.f32 %v2513_v45, %v974_v46  ;;  %v2475_v45 = vld [vmem:[%s3309_s10 + $0x18] sm:$0xff]  }
 0x306   : > { %2367 = vmatpush3.bf16.msra.mxu1 %v2475_v45 }
 0x307   : > { %v979_v49 = vpack.c.bf16 %v978_v48, %v977_v47  ;;  %1464 = vmatprep.subr.bf16.mxu1 %v2635_v9 }
 0x309   : > { %2361 = vmatmul.mubr.msk.bf16.vlgmr.msra.gmra.mrb[12].mxu0 %vm786_vm6, %v979_v49 }
 0x30a   : > { %1187 = vmatpush1.bf16.msra.mxu0 %v2464_v50 }
 0x30b   : > { %1188 = vmatprep.subr.bf16.mxu0 %v2635_v9 }
 0x30e   : > { %1189 = vmatpush1.bf16.msra.mxu0 %v2465_v51 }
 0x30f   : > { %1190 = vmatprep.subr.bf16.mxu0 %v2635_v9 }
 0x312   : > { %1191 = vmatpush1.bf16.msra.mxu0 %v2466_v52 }
 0x313   : > { %1192 = vmatprep.subr.bf16.mxu0 %v2635_v9 }
 0x316   : > { %1193 = vmatpush1.bf16.msra.mxu0 %v2467_v53 }
 0x317   : > { %1194 = vmatprep.subr.bf16.mxu0 %v2635_v9 }
 0x31a   : > { %1195 = vmatpush1.bf16.msra.mxu0 %v2468_v54 }
 0x31b   : > { %1196 = vmatprep.subr.bf16.mxu0 %v2635_v9 }
 0x31e   : > { %1197 = vmatpush1.bf16.msra.mxu0 %v2469_v55  ;;  %v2476_v55 = vld [vmem:[%s3305_s6 + $0xa0] sm:$0xff]  }
 0x31f   : > { %1198 = vmatprep.subr.bf16.mxu0 %v2635_v9 }
 0x322   : > { %1199 = vmatpush1.bf16.msra.mxu0 %v2470_v56  ;;  %v2477_v56 = vld [vmem:[%s3305_s6 + $0xa8] sm:$0xff]  }
 0x323   : > { %1200 = vmatprep.subr.bf16.mxu0 %v2635_v9 }
 0x326   : > { %1201 = vmatpush1.bf16.msra.mxu0 %v2471_v7 }
 0x327   : > { %1202 = vmatprep.subr.bf16.mxu0 %v2635_v9 }
 0x3dc   : > { %v1040_v58 = vpop.f32.mrb[12].mxu0 }
 0x3dd   : > { %v2966_v59 = vadd.f32 %v2152_v57, %v1040_v58  ;;  %v2362_v60 = vpop.f32.mrb[13].mxu0  ;;  %v2479_v58 = vld [vmem:[%s3305_s6 + $0xb8] sm:$0xff]  }
 0x3de   : > { %v1043_v62 = vpop.f32.mrb[14].mxu0  ;;  %v2480_v60 = vld [vmem:[%s3305_s6 + $0xc0] sm:$0xff]  }
 0x3df   : > { %v1047_v0 = vadd.f32 %v2966_v59, %v2898_v63  ;;  %v2970_v2 = vadd.f32 %v2152_v57, %v1043_v62  ;;  %v2363_v3 = vpop.f32.mrb[15].mxu0  ;;  %v2472_v63 = vld [vmem:[%s3305_s6 + $0x90] sm:$0xff]   ;;  %v2481_v62 = vld [vmem:[%s3305_s6 + $0xc8] sm:$0xff]  }
 0x3e0   : > { %1203 = vmatpush1.bf16.msra.mxu0 %v2472_v63  ;;  %v2478_v57 = vld [vmem:[%s3305_s6 + $0xb0] sm:$0xff]   ;;  %v2195_v3 = vld [vmem:[%s3310_s11 + $0x1] ss:$0 sm:$0xff] }
 0x3e1   : > { %v1049_v4 = vmul.f32 %v2872_v37, %v1047_v0  ;;  %v1048_v5 = vadd.f32 %v2970_v2, %v2892_v61  ;;  %v2473_v61 = vld [vmem:[%s3305_s6 + $0x98] sm:$0xff]   ;;  %1204 = vmatprep.subr.bf16.mxu0 %v2635_v9  ;;  %v2482_v0 = vld [vmem:[%s3305_s6 + $0xd0] sm:$0xff]  }
 0x3e3   : > { %1051 = vst.msk [vmem:[#allocation2 + $0x2] sm:$0xff] %vm786_vm6, %v1049_v4  ;;  %v1050_v6 = vmul.f32 %v2875_v41, %v1048_v5 }
 0x3e4   : > { %1205 = vmatpush1.bf16.msra.mxu0 %v2473_v61 }
 0x3e5   : > { %1052 = vst.msk [vmem:[#allocation2 + $0xa] sm:$0xff] %vm786_vm6, %v1050_v6  ;;  %2372 = vmatprep.subr.bf16.mxu0 %v2633_v1 }
 0x3ea   : > { %v1069_v8 = vld [vmem:[#allocation2 + $0x1] sm:$0xff] }
 0x3eb   : > { %v2989_v11 = vld [vmem:[#allocation2 + $0x2] sm:$0xff] }
 0x3ec   : > { %v1070_v10 = vld [vmem:[#allocation2 + $0x9] sm:$0xff]  ;;  %v1065_v17 = vld [vmem:[#allocation2] sm:$0xff] }
 0x3ed   : > { %v2991_v12 = vld [vmem:[#allocation2 + $0xa] sm:$0xff]  ;;  %v1071_v13 = vpack.c.bf16 %v1070_v10, %v1069_v8 }
 0x3ee   : > { %v1077_v14 = vpack.c.bf16 %v2991_v12, %v2989_v11  ;;  %v1091_v15 = vld [vmem:[#allocation2 + $0x4] sm:$0xff]  ;;  %v1092_v16 = vld [vmem:[#allocation2 + $0xc] sm:$0xff] }
 0x3ef   : > { %v1083_v18 = vld [vmem:[#allocation2 + $0x3] sm:$0xff]  ;;  %v1084_v19 = vld [vmem:[#allocation2 + $0xb] sm:$0xff]  ;;  %v1093_v20 = vpack.c.bf16 %v1092_v16, %v1091_v15  ;;  %1073 = vrot.lane.b32.xlu1 %v1071_v13, %s3320_s29  ;;  %v2483_v15 = vld [vmem:[%s3305_s6 + $0xd8] sm:$0xff]   ;;  %s3332_s29 = smov 32  }
 0x3f0   : > { %v1066_v21 = vld [vmem:[#allocation2 + $0x8] sm:$0xff]  ;;  %1079 = vrot.lane.b32.xlu0 %v1077_v14, %s3330_s17  ;;  %v1085_v23 = vpack.c.bf16 %v1084_v19, %v1083_v18 }
 0x3f1   : > { %v1067_v22 = vpack.c.bf16 %v1066_v21, %v1065_v17  ;;  %1094 = vst.msk [vmem:[#allocation3 + $0x8] sm:$0xff] %vm786_vm6, %v1093_v20 }
 0x3f3   : > { %1068 = vst.msk [vmem:[#allocation3] sm:$0xff] %vm786_vm6, %v1067_v22  ;;  %1087 = vrot.lane.b32.xlu1 %v1085_v23, %s3331_s26 }
 0x3f8   : > { %v1096_v24 = vld [vmem:[#allocation3 + $0x8] sm:$0xff] }
 0x3f9   : > { %2187 = vmatprep.mubr.msk.bf16.mxu0 %vm786_vm6, %v1096_v24 }
 0x461   : > { %v1074_v25 = vpop.permute.xlu1 %1073 }
 0x462   : > { %v1080_v26 = vpop.permute.xlu0 %1079  ;;  %1076 = vst.msk [vmem:[#allocation3] sm:$0xff] %vm802_vm7, %v1074_v25 }
 0x463   : > { %1082 = vst.msk [vmem:[#allocation3] sm:$0xff] %vm809_vm8, %v1080_v26 }
 0x465   : > { %v1088_v27 = vpop.permute.xlu1 %1087 }
 0x466   : > { %1090 = vst.msk [vmem:[#allocation3] sm:$0xff] %vm818_vm9, %v1088_v27 }
 0x46d   : > { %v1095_v28 = vld [vmem:[#allocation3] sm:$0xff] }
 0x46e   : > { %1219 = vmatmul.mubr.bf16.vlgmr.msra.gmra.mrb[16].mxu0 %v1095_v28 }
 0x46f   : > { %2376 = vmatprep.mubr.msk.bf16.mxu0 %vm2634_vm0, %v2633_v1 }
 0x541   : > { %v1220_v31 = vpop.f32.mrb[16].mxu0 }
 0x542   : > { %v1221_v32 = vadd.f32 %v2176_v30, %v1220_v31  ;;  %v1222_v33 = vpop.f32.mrb[17].mxu0 }
 0x543   : > { %v1223_v34 = vpop.f32.mrb[18].mxu0 }
 0x544   : > { %v2188_v35 = vmul.f32 -1.442695, %v1221_v32  ;;  %v1224_v36 = vadd.f32 %v2176_v30, %v1223_v34  ;;  %v1225_v38 = vpop.f32.mrb[19].mxu0 }
 0x545   : > { %v2219_v38 = vld [vmem:[#allocation5 + $0x2] ss:$0 sm:$0xff] }
 0x546   : > { %2514 = vpow2.f32 %v2188_v35  ;;  %v2189_v39 = vmul.f32 -1.442695, %v1224_v36 }
 0x548   : > { %2516 = vpow2.f32 %v2189_v39 }
 0x550   : > { %v2515_v40 = vpop.eup %2514 }
 0x551   : > { %v1235_v42 = vadd.f32 1.0, %v2515_v40 }
 0x552   : > { %v2517_v43 = vpop.eup %2516 }
 0x553   : > { %2518 = vrcp.f32 %v1235_v42  ;;  %v1236_v44 = vadd.f32 1.0, %v2517_v43 }
 0x555   : > { %2520 = vrcp.f32 %v1236_v44 }
 0x556   : > { %2522 = vtanh.f32 %v1221_v32 }
 0x557   : > { %2524 = vtanh.f32 %v1224_v36  ;;  %v2486_v36 = vld [vmem:[%s3309_s10 + $0x20] sm:$0xff]  }
 0x558   : > { %2373 = vmatpush3.bf16.msra.mxu0 %v2486_v36 }
 0x559   : > { %2374 = vmatprep.subr.bf16.mxu0 %v2633_v1 }
 0x55d   : > { %v2519_v46 = vpop.eup %2518 }
 0x55e   : > { %1243 = vrot.lane.b32.xlu0 %v2519_v46, %s3331_s26 }
 0x55f   : > { %v2521_v47 = vpop.eup %2520 }
 0x560   : > { %1245 = vrot.lane.b32.xlu1 %v2521_v47, %s3331_s26  ;;  %v2523_v49 = vpop.eup %2522 }
 0x561   : > { %v2525_v50 = vpop.eup %2524 }
 0x5d0   : > { %v1244_v48 = vpop.permute.xlu0 %1243 }
 0x5d1   : > { %v1249_v52 = vmul.f32 %v2523_v49, %v1244_v48 }
 0x5d2   : > { %v1246_v51 = vpop.permute.xlu1 %1245 }
 0x5d3   : > { %v1250_v53 = vmul.f32 %v2525_v50, %v1246_v51 }
 0x5d5   : > { %v1251_v54 = vpack.c.bf16 %v1250_v53, %v1249_v52  ;;  %v2487_v52 = vld [vmem:[%s3309_s10 + $0x28] sm:$0xff]  }
 0x5d6   : > { %2375 = vmatpush3.bf16.msra.mxu0 %v2487_v52 }
 0x5d7   : > { %2369 = vmatmul.mubr.msk.bf16.vlgmr.msra.gmra.mrb[12].mxu1 %vm786_vm6, %v1251_v54  ;;  %1742 = vmatprep.subr.bf16.mxu0 %v2635_v9 }
 0x5d8   : > { %1465 = vmatpush1.bf16.msra.mxu1 %v2476_v55 }
 0x5d9   : > { %1466 = vmatprep.subr.bf16.mxu1 %v2635_v9 }
 0x5dc   : > { %1467 = vmatpush1.bf16.msra.mxu1 %v2477_v56 }
 0x5dd   : > { %1468 = vmatprep.subr.bf16.mxu1 %v2635_v9 }
 0x5e0   : > { %1469 = vmatpush1.bf16.msra.mxu1 %v2478_v57 }
 0x5e1   : > { %1470 = vmatprep.subr.bf16.mxu1 %v2635_v9 }
 0x5e4   : > { %1471 = vmatpush1.bf16.msra.mxu1 %v2479_v58 }
 0x5e5   : > { %1472 = vmatprep.subr.bf16.mxu1 %v2635_v9 }
 0x5e8   : > { %1473 = vmatpush1.bf16.msra.mxu1 %v2480_v60 }
 0x5e9   : > { %1474 = vmatprep.subr.bf16.mxu1 %v2635_v9 }
 0x5ec   : > { %1475 = vmatpush1.bf16.msra.mxu1 %v2481_v62 }
 0x5ed   : > { %1476 = vmatprep.subr.bf16.mxu1 %v2635_v9 }
 0x5f0   : > { %1477 = vmatpush1.bf16.msra.mxu1 %v2482_v0 }
 0x5f1   : > { %1478 = vmatprep.subr.bf16.mxu1 %v2635_v9 }
 0x5f4   : > { %1479 = vmatpush1.bf16.msra.mxu1 %v2483_v15 }
 0x5f5   : > { %1480 = vmatprep.subr.bf16.mxu1 %v2635_v9 }
 0x6aa   : > { %v1314_v4 = vpop.f32.mrb[12].mxu1 }
 0x6ab   : > { %v3049_v5 = vadd.f32 %v2195_v3, %v1314_v4  ;;  %v2370_v6 = vpop.f32.mrb[13].mxu1  ;;  %v2489_v4 = vld [vmem:[%s3305_s6 + $0xf8] sm:$0xff]  }
 0x6ac   : > { %v1317_v7 = vpop.f32.mrb[14].mxu1  ;;  %v2490_v6 = vld [vmem:[%s3305_s6 + $0x100] sm:$0xff]  }
 0x6ad   : > { %v1321_v63 = vadd.f32 %v3049_v5, %v2989_v11  ;;  %v3053_v61 = vadd.f32 %v2195_v3, %v1317_v7  ;;  %v2371_v8 = vpop.f32.mrb[15].mxu1  ;;  %v2484_v11 = vld [vmem:[%s3305_s6 + $0xe0] sm:$0xff]   ;;  %v2488_v3 = vld [vmem:[%s3305_s6 + $0xf0] sm:$0xff]   ;;  %v2491_v7 = vld [vmem:[%s3305_s6 + $0x108] sm:$0xff]  }
 0x6ae   : > { %1481 = vmatpush1.bf16.msra.mxu1 %v2484_v11  ;;  %v2493_v8 = vld [vmem:[%s3305_s6 + $0x118] sm:$0xff]  }
 0x6af   : > { %v1323_v10 = vmul.f32 %v2872_v37, %v1321_v63  ;;  %v1322_v13 = vadd.f32 %v3053_v61, %v2991_v12  ;;  %v2485_v12 = vld [vmem:[%s3305_s6 + $0xe8] sm:$0xff]   ;;  %1482 = vmatprep.subr.bf16.mxu1 %v2635_v9  ;;  %v2492_v63 = vld [vmem:[%s3305_s6 + $0x110] sm:$0xff]  }
 0x6b1   : > { %1325 = vst.msk [vmem:[#allocation2 + $0x2] sm:$0xff] %vm786_vm6, %v1323_v10  ;;  %v1324_v14 = vmul.f32 %v2875_v41, %v1322_v13  ;;  %v2494_v10 = vld [vmem:[%s3305_s6 + $0x120] sm:$0xff]  }
 0x6b2   : > { %1483 = vmatpush1.bf16.msra.mxu1 %v2485_v12  ;;  %v2238_v13 = vld [vmem:[%s3310_s11 + $0x2] ss:$0 sm:$0xff] }
 0x6b3   : > { %1326 = vst.msk [vmem:[#allocation2 + $0xa] sm:$0xff] %vm786_vm6, %v1324_v14  ;;  %2380 = vmatprep.subr.bf16.mxu1 %v2633_v1 }
 0x6b8   : > { %v1347_v16 = vld [vmem:[#allocation2 + $0x1] sm:$0xff] }
 0x6b9   : > { %v3072_v18 = vld [vmem:[#allocation2 + $0x2] sm:$0xff] }
 0x6ba   : > { %v1348_v17 = vld [vmem:[#allocation2 + $0x9] sm:$0xff]  ;;  %v1343_v24 = vld [vmem:[#allocation2] sm:$0xff] }
 0x6bb   : > { %v3074_v19 = vld [vmem:[#allocation2 + $0xa] sm:$0xff]  ;;  %v1349_v20 = vpack.c.bf16 %v1348_v17, %v1347_v16 }
 0x6bc   : > { %v1355_v21 = vpack.c.bf16 %v3074_v19, %v3072_v18  ;;  %v1369_v22 = vld [vmem:[#allocation2 + $0x4] sm:$0xff]  ;;  %v1370_v23 = vld [vmem:[#allocation2 + $0xc] sm:$0xff] }
 0x6bd   : > { %v1361_v25 = vld [vmem:[#allocation2 + $0x3] sm:$0xff]  ;;  %v1362_v26 = vld [vmem:[#allocation2 + $0xb] sm:$0xff]  ;;  %v1371_v27 = vpack.c.bf16 %v1370_v23, %v1369_v22  ;;  %1351 = vrot.lane.b32.xlu0 %v1349_v20, %s3332_s29 }
 0x6be   : > { %v1344_v28 = vld [vmem:[#allocation2 + $0x8] sm:$0xff]  ;;  %1357 = vrot.lane.b32.xlu1 %v1355_v21, %s3330_s17  ;;  %v1363_v30 = vpack.c.bf16 %v1362_v26, %v1361_v25 }
 0x6bf   : > { %v1345_v29 = vpack.c.bf16 %v1344_v28, %v1343_v24  ;;  %1372 = vst.msk [vmem:[#allocation3 + $0x8] sm:$0xff] %vm786_vm6, %v1371_v27  ;;  %v2495_v24 = vld [vmem:[%s3305_s6 + $0x128] sm:$0xff]  }
 0x6c1   : > { %1346 = vst.msk [vmem:[#allocation3] sm:$0xff] %vm786_vm6, %v1345_v29  ;;  %1365 = vrot.lane.b32.xlu0 %v1363_v30, %s3331_s26 }
 0x6c6   : > { %v1374_v31 = vld [vmem:[#allocation3 + $0x8] sm:$0xff] }
 0x6c7   : > { %2230 = vmatprep.mubr.msk.bf16.mxu1 %vm786_vm6, %v1374_v31 }
 0x72f   : > { %v1352_v32 = vpop.permute.xlu0 %1351 }
 0x730   : > { %v1358_v33 = vpop.permute.xlu1 %1357  ;;  %1354 = vst.msk [vmem:[#allocation3] sm:$0xff] %vm802_vm7, %v1352_v32 }
 0x731   : > { %1360 = vst.msk [vmem:[#allocation3] sm:$0xff] %vm809_vm8, %v1358_v33 }
 0x733   : > { %v1366_v34 = vpop.permute.xlu0 %1365 }
 0x734   : > { %1368 = vst.msk [vmem:[#allocation3] sm:$0xff] %vm818_vm9, %v1366_v34 }
 0x73b   : > { %v1373_v35 = vld [vmem:[#allocation3] sm:$0xff] }
 0x73c   : > { %1497 = vmatmul.mubr.bf16.vlgmr.msra.gmra.mrb[16].mxu1 %v1373_v35 }
 0x73d   : > { %2384 = vmatprep.mubr.msk.bf16.mxu1 %vm2634_vm0, %v2633_v1 }
 0x80f   : > { %v1498_v39 = vpop.f32.mrb[16].mxu1 }
 0x810   : > { %v1499_v40 = vadd.f32 %v2219_v38, %v1498_v39  ;;  %v1500_v42 = vpop.f32.mrb[17].mxu1 }
 0x811   : > { %v1501_v43 = vpop.f32.mrb[18].mxu1 }
 0x812   : > { %v2231_v44 = vmul.f32 -1.442695, %v1499_v40  ;;  %v1502_v45 = vadd.f32 %v2219_v38, %v1501_v43  ;;  %v1503_v46 = vpop.f32.mrb[19].mxu1 }
 0x813   : > { %v2498_v46 = vld [vmem:[%s3309_s10 + $0x30] sm:$0xff]  }
 0x814   : > { %2526 = vpow2.f32 %v2231_v44  ;;  %v2232_v47 = vmul.f32 -1.442695, %v1502_v45  ;;  %2381 = vmatpush3.bf16.msra.mxu1 %v2498_v46  ;;  %v2285_v46 = vld [vmem:[%s3312_s13] ss:$0 sm:$0xff] }
 0x815   : > { %2382 = vmatprep.subr.bf16.mxu1 %v2633_v1 }
 0x816   : > { %2528 = vpow2.f32 %v2232_v47  ;;  %v2262_v47 = vld [vmem:[#allocation5 + $0x3] ss:$0 sm:$0xff] }
 0x81e   : > { %v2527_v48 = vpop.eup %2526 }
 0x81f   : > { %v1513_v49 = vadd.f32 1.0, %v2527_v48 }
 0x820   : > { %v2529_v50 = vpop.eup %2528 }
 0x821   : > { %2530 = vrcp.f32 %v1513_v49  ;;  %v1514_v51 = vadd.f32 1.0, %v2529_v50 }
 0x823   : > { %2532 = vrcp.f32 %v1514_v51 }
 0x824   : > { %2534 = vtanh.f32 %v1499_v40 }
 0x825   : > { %2536 = vtanh.f32 %v1502_v45 }
 0x82b   : > { %v2531_v53 = vpop.eup %2530 }
 0x82c   : > { %1521 = vrot.lane.b32.xlu1 %v2531_v53, %s3331_s26 }
 0x82d   : > { %v2533_v54 = vpop.eup %2532 }
 0x82e   : > { %1523 = vrot.lane.b32.xlu0 %v2533_v54, %s3331_s26  ;;  %v2535_v56 = vpop.eup %2534 }
 0x82f   : > { %v2537_v57 = vpop.eup %2536 }
 0x89e   : > { %v1522_v55 = vpop.permute.xlu1 %1521 }
 0x89f   : > { %v1527_v60 = vmul.f32 %v2535_v56, %v1522_v55 }
 0x8a0   : > { %v1524_v58 = vpop.permute.xlu0 %1523 }
 0x8a1   : > { %v1528_v62 = vmul.f32 %v2537_v57, %v1524_v58 }
 0x8a3   : > { %v1529_v0 = vpack.c.bf16 %v1528_v62, %v1527_v60  ;;  %v2499_v62 = vld [vmem:[%s3309_s10 + $0x38] sm:$0xff]  }
 0x8a4   : > { %2383 = vmatpush3.bf16.msra.mxu1 %v2499_v62 }
 0x8a5   : > { %2377 = vmatmul.mubr.msk.bf16.vlgmr.msra.gmra.mrb[20].mxu0 %vm786_vm6, %v1529_v0  ;;  %2388 = vmatprep.subr.bf16.mxu1 %v2633_v1 }
 0x8a6   : > { %1743 = vmatpush1.bf16.msra.mxu0 %v2488_v3 }
 0x8a7   : > { %1744 = vmatprep.subr.bf16.mxu0 %v2635_v9 }
 0x8aa   : > { %1745 = vmatpush1.bf16.msra.mxu0 %v2489_v4 }
 0x8ab   : > { %1746 = vmatprep.subr.bf16.mxu0 %v2635_v9 }
 0x8ae   : > { %1747 = vmatpush1.bf16.msra.mxu0 %v2490_v6 }
 0x8af   : > { %1748 = vmatprep.subr.bf16.mxu0 %v2635_v9 }
 0x8b2   : > { %1749 = vmatpush1.bf16.msra.mxu0 %v2491_v7 }
 0x8b3   : > { %1750 = vmatprep.subr.bf16.mxu0 %v2635_v9 }
 0x8b6   : > { %1751 = vmatpush1.bf16.msra.mxu0 %v2492_v63 }
 0x8b7   : > { %1752 = vmatprep.subr.bf16.mxu0 %v2635_v9 }
 0x8ba   : > { %1753 = vmatpush1.bf16.msra.mxu0 %v2493_v8 }
 0x8bb   : > { %1754 = vmatprep.subr.bf16.mxu0 %v2635_v9 }
 0x8be   : > { %1755 = vmatpush1.bf16.msra.mxu0 %v2494_v10 }
 0x8bf   : > { %1756 = vmatprep.subr.bf16.mxu0 %v2635_v9 }
 0x8c2   : > { %1757 = vmatpush1.bf16.msra.mxu0 %v2495_v24  ;;  %v2500_v24 = vld [vmem:[%s3311_s12] sm:$0xff]  }
 0x8c3   : > { %1758 = vmatprep.subr.bf16.mxu0 %v2635_v9 }
 0x978   : > { %v1592_v14 = vpop.f32.mrb[20].mxu0 }
 0x979   : > { %v3132_v15 = vadd.f32 %v2238_v13, %v1592_v14  ;;  %v2378_v11 = vpop.f32.mrb[21].mxu0 }
 0x97a   : > { %v1595_v12 = vpop.f32.mrb[22].mxu0 }
 0x97b   : > { %v1599_v16 = vadd.f32 %v3132_v15, %v3072_v18  ;;  %v3136_v17 = vadd.f32 %v2238_v13, %v1595_v12  ;;  %v2379_v20 = vpop.f32.mrb[23].mxu0  ;;  %v2496_v18 = vld [vmem:[%s3305_s6 + $0x130] sm:$0xff]  }
 0x97c   : > { %1759 = vmatpush1.bf16.msra.mxu0 %v2496_v18  ;;  %v2501_v18 = vld [vmem:[%s3311_s12 + $0x8] sm:$0xff]  }
 0x97d   : > { %v1601_v21 = vmul.f32 %v2872_v37, %v1599_v16  ;;  %v1600_v22 = vadd.f32 %v3136_v17, %v3074_v19  ;;  %v2497_v19 = vld [vmem:[%s3305_s6 + $0x138] sm:$0xff]   ;;  %1760 = vmatprep.subr.bf16.mxu0 %v2635_v9 }
 0x97f   : > { %1603 = vst.msk [vmem:[#allocation2 + $0x2] sm:$0xff] %vm786_vm6, %v1601_v21  ;;  %v1602_v23 = vmul.f32 %v2875_v41, %v1600_v22 }
 0x980   : > { %1761 = vmatpush1.bf16.msra.mxu0 %v2497_v19  ;;  %v2281_v19 = vld [vmem:[%s3310_s11 + $0x3] ss:$0 sm:$0xff] }
 0x981   : > { %1604 = vst.msk [vmem:[#allocation2 + $0xa] sm:$0xff] %vm786_vm6, %v1602_v23 }
 0x986   : > { %v1625_v25 = vld [vmem:[#allocation2 + $0x1] sm:$0xff] }
 0x987   : > { %v3155_v27 = vld [vmem:[#allocation2 + $0x2] sm:$0xff] }
 0x988   : > { %v1626_v26 = vld [vmem:[#allocation2 + $0x9] sm:$0xff]  ;;  %v1621_v33 = vld [vmem:[#allocation2] sm:$0xff] }
 0x989   : > { %v3157_v28 = vld [vmem:[#allocation2 + $0xa] sm:$0xff]  ;;  %v1627_v29 = vpack.c.bf16 %v1626_v26, %v1625_v25 }
 0x98a   : > { %v1633_v30 = vpack.c.bf16 %v3157_v28, %v3155_v27  ;;  %v1647_v31 = vld [vmem:[#allocation2 + $0x4] sm:$0xff]  ;;  %v1648_v32 = vld [vmem:[#allocation2 + $0xc] sm:$0xff] }
 0x98b   : > { %v1639_v34 = vld [vmem:[#allocation2 + $0x3] sm:$0xff]  ;;  %v1640_v35 = vld [vmem:[#allocation2 + $0xb] sm:$0xff]  ;;  %v1649_v36 = vpack.c.bf16 %v1648_v32, %v1647_v31  ;;  %1629 = vrot.lane.b32.xlu1 %v1627_v29, %s3332_s29 }
 0x98c   : > { %v1622_v38 = vld [vmem:[#allocation2 + $0x8] sm:$0xff]  ;;  %1635 = vrot.lane.b32.xlu0 %v1633_v30, %s3330_s17  ;;  %v1641_v39 = vpack.c.bf16 %v1640_v35, %v1639_v34 }
 0x98d   : > { %v1623_v9 = vpack.c.bf16 %v1622_v38, %v1621_v33  ;;  %1650 = vst.msk [vmem:[#allocation3 + $0x8] sm:$0xff] %vm786_vm6, %v1649_v36 }
 0x98f   : > { %1624 = vst.msk [vmem:[#allocation3] sm:$0xff] %vm786_vm6, %v1623_v9  ;;  %1643 = vrot.lane.b32.xlu1 %v1641_v39, %s3331_s26 }
 0x994   : > { %v1652_v40 = vld [vmem:[#allocation3 + $0x8] sm:$0xff] }
 0x995   : > { %2273 = vmatprep.mubr.msk.bf16.mxu0 %vm786_vm6, %v1652_v40 }
 0x9fd   : > { %v1630_v42 = vpop.permute.xlu1 %1629 }
 0x9fe   : > { %v1636_v43 = vpop.permute.xlu0 %1635  ;;  %1632 = vst.msk [vmem:[#allocation3] sm:$0xff] %vm802_vm7, %v1630_v42 }
 0x9ff   : > { %1638 = vst.msk [vmem:[#allocation3] sm:$0xff] %vm809_vm8, %v1636_v43 }
 0xa01   : > { %v1644_v44 = vpop.permute.xlu1 %1643 }
 0xa02   : > { %1646 = vst.msk [vmem:[#allocation3] sm:$0xff] %vm818_vm9, %v1644_v44 }
 0xa09   : > { %v1651_v45 = vld [vmem:[#allocation3] sm:$0xff] }
 0xa0a   : > { %1775 = vmatmul.mubr.bf16.vlgmr.msra.gmra.mrb[24].mxu0 %v1651_v45 }
 0xadd   : > { %v1776_v48 = vpop.f32.mrb[24].mxu0 }
 0xade   : > { %v1777_v49 = vadd.f32 %v2262_v47, %v1776_v48  ;;  %v1778_v50 = vpop.f32.mrb[25].mxu0 }
 0xadf   : > { %v1779_v51 = vpop.f32.mrb[26].mxu0 }
 0xae0   : > { %v2274_v52 = vmul.f32 -1.442695, %v1777_v49  ;;  %v1780_v53 = vadd.f32 %v2262_v47, %v1779_v51  ;;  %v1781_v54 = vpop.f32.mrb[27].mxu0 }
 0xae2   : > { %2538 = vpow2.f32 %v2274_v52  ;;  %v2275_v55 = vmul.f32 -1.442695, %v1780_v53 }
 0xae4   : > { %2540 = vpow2.f32 %v2275_v55 }
 0xaec   : > { %v2539_v56 = vpop.eup %2538 }
 0xaed   : > { %v1791_v57 = vadd.f32 1.0, %v2539_v56 }
 0xaee   : > { %v2541_v58 = vpop.eup %2540 }
 0xaef   : > { %2542 = vrcp.f32 %v1791_v57  ;;  %v1792_v60 = vadd.f32 1.0, %v2541_v58 }
 0xaf1   : > { %2544 = vrcp.f32 %v1792_v60  ;;  %v2298_v60 = vld [vmem:[%s479_s30] sm:$0xff]   ;;  %s2572_s30 = scalar_lea.vmem %s2571_s22, 512 }
 0xaf2   : > { %2546 = vtanh.f32 %v1777_v49  ;;  %v2299_v62 = vunpack.c.l.bf16 %v2298_v60 }
 0xaf3   : > { %2548 = vtanh.f32 %v1780_v53 }
 0xaf9   : > { %v2543_v0 = vpop.eup %2542 }
 0xafa   : > { %1799 = vrot.lane.b32.xlu0 %v2543_v0, %s3331_s26  ;;  %v2300_v0 = vunpack.c.h.bf16 %v2298_v60 }
 0xafb   : > { %v2545_v3 = vpop.eup %2544 }
 0xafc   : > { %1801 = vrot.lane.b32.xlu1 %v2545_v3, %s3331_s26  ;;  %v2547_v6 = vpop.eup %2546 }
 0xafe   : > { %1055 = vrot.lane.b32.xlu0 %v2966_v59, %s3331_s26  ;;  %v2549_v59 = vpop.eup %2548 }
 0xb00   : > { %1057 = vrot.lane.b32.xlu1 %v2970_v2, %s3331_s26 }
 0xb02   : > { %1331 = vrot.lane.b32.xlu0 %v3049_v5, %s3331_s26 }
 0xb04   : > { %1333 = vrot.lane.b32.xlu1 %v3053_v61, %s3331_s26 }
 0xb06   : > { %1609 = vrot.lane.b32.xlu0 %v3132_v15, %s3331_s26 }
 0xb08   : > { %1611 = vrot.lane.b32.xlu1 %v3136_v17, %s3331_s26 }
 0xb6c   : > { %v1800_v4 = vpop.permute.xlu0 %1799 }
 0xb6d   : > { %v1805_v63 = vmul.f32 %v2547_v6, %v1800_v4 }
 0xb6e   : > { %v1802_v7 = vpop.permute.xlu1 %1801 }
 0xb6f   : > { %v1806_v2 = vmul.f32 %v2549_v59, %v1802_v7 }
 0xb70   : > { %v1056_v8 = vpop.permute.xlu0 %1055 }
 0xb71   : > { %v1807_v10 = vpack.c.bf16 %v1806_v2, %v1805_v63  ;;  %1061 = vst.msk [vmem:[#allocation4] sm:$0xff] %vm786_vm6, %v1056_v8 }
 0xb72   : > { %v1058_v5 = vpop.permute.xlu1 %1057 }
 0xb73   : > { %1062 = vst.msk [vmem:[#allocation4 + $0x8] sm:$0xff] %vm786_vm6, %v1058_v5  ;;  %2385 = vmatmul.mubr.msk.bf16.vlgmr.msra.gmra.mrb[20].mxu1 %vm786_vm6, %v1807_v10 }
 0xb74   : > { %2392 = vmatprep.mubr.msk.bf16.mxu1 %vm2634_vm0, %v2633_v1  ;;  %v1332_v13 = vpop.permute.xlu0 %1331  ;;  %2389 = vmatpush3.bf16.msra.mxu1 %v2500_v24 }
 0xb75   : > { %2390 = vmatprep.subr.bf16.mxu1 %v2633_v1 }
 0xb76   : > { %v1334_v11 = vpop.permute.xlu1 %1333 }
 0xb78   : > { %v1327_v61 = vld [vmem:[#allocation4] sm:$0xff]  ;;  %v1610_v17 = vpop.permute.xlu0 %1609  ;;  %2391 = vmatpush3.bf16.msra.mxu1 %v2501_v18 }
 0xb79   : > { %v1337_v14 = vadd.f32 %v1332_v13, %v1327_v61 }
 0xb7a   : > { %v1328_v15 = vld [vmem:[#allocation4 + $0x8] sm:$0xff]  ;;  %v1612_v22 = vpop.permute.xlu1 %1611 }
 0xb7b   : > { %1339 = vst.msk [vmem:[#allocation4] sm:$0xff] %vm786_vm6, %v1337_v14  ;;  %v1338_v12 = vadd.f32 %v1334_v11, %v1328_v15 }
 0xb7d   : > { %1340 = vst.msk [vmem:[#allocation4 + $0x8] sm:$0xff] %vm786_vm6, %v1338_v12 }
 0xb82   : > { %v1605_v16 = vld [vmem:[#allocation4] sm:$0xff] }
 0xb83   : > { %v1615_v20 = vadd.f32 %v1610_v17, %v1605_v16 }
 0xb84   : > { %v1606_v21 = vld [vmem:[#allocation4 + $0x8] sm:$0xff] }
 0xb85   : > { %1617 = vst.msk [vmem:[#allocation4] sm:$0xff] %vm786_vm6, %v1615_v20  ;;  %v1616_v23 = vadd.f32 %v1612_v22, %v1606_v21 }
 0xb87   : > { %1618 = vst.msk [vmem:[#allocation4 + $0x8] sm:$0xff] %vm786_vm6, %v1616_v23 }
 0xb8c   : > { %v1883_v36 = vld [vmem:[#allocation4] sm:$0xff] }
 0xb8e   : > { %v1884_v9 = vld [vmem:[#allocation4 + $0x8] sm:$0xff] }
 0xc46   : > { %v1870_v25 = vpop.f32.mrb[20].mxu1 }
 0xc47   : > { %v1871_v26 = vadd.f32 %v2281_v19, %v1870_v25  ;;  %v2386_v29 = vpop.f32.mrb[21].mxu1 }
 0xc48   : > { %v1873_v30 = vpop.f32.mrb[22].mxu1 }
 0xc49   : > { %v1877_v31 = vadd.f32 %v1871_v26, %v3155_v27  ;;  %v1874_v32 = vadd.f32 %v2281_v19, %v1873_v30  ;;  %1887 = vrot.lane.b32.xlu0 %v1871_v26, %s3331_s26  ;;  %v2387_v33 = vpop.f32.mrb[23].mxu1 }
 0xc4b   : > { %v1879_v34 = vmul.f32 %v2872_v37, %v1877_v31  ;;  %v1878_v35 = vadd.f32 %v1874_v32, %v3157_v28  ;;  %1889 = vrot.lane.b32.xlu1 %v1874_v32, %s3331_s26  ;;  %s464_s26 = sand.u32 1, %s2622_s19  }
 0xc4c   : > { %s2107_s25 = sshll.u32 %s464_s26, 4  ;;  %s3258_s16 = scalar_lea.sflag [#allocation9], %s464_s26 }
 0xc4d   : > { %1881 = vst.msk [vmem:[#allocation2 + $0x2] sm:$0xff] %vm786_vm6, %v1879_v34  ;;  %v1880_v1 = vmul.f32 %v2875_v41, %v1878_v35  ;;  %s3231_s24 = scalar_lea.vmem [#allocation8], %s2107_s25 }
 0xc4e   : > { %s2020_s17 = sshll.u32 %s3231_s24, 4  ;;  %s3252_s17 = int_to_ptr.vmem [resolvable:$true] %s2020_s17 }
 0xc4f   : > { %1882 = vst.msk [vmem:[#allocation2 + $0xa] sm:$0xff] %vm786_vm6, %v1880_v1  ;;  %s2566_s21 = scalar_lea.vmem %s3252_s17, 256  ;;  %p2573_p5 = scmp.lt.s32.totalorder %s3252_s17, %s2571_s22 }
 0xc50   : > { %p2567_p2 = scmp.ne.s32.totalorder %s3252_s17, %s2566_s21  ;;  %p2574_p6 = scmp.lt.s32.totalorder %s2572_s30, %s2566_s21 }
 0xc52   : > { %p2568_p3 = pnand %p2567_p2, %p2760_p10  ;;  %p2575_p7 = por %p2574_p6, %p2573_p5 }
 0xc54   : > { %p2569_p4 = pneg %p2568_p3 }
 0xc56   : > { %p2576_p8 = pnand %p2575_p7, %p2569_p4 }
 0xcbb   : > { %v1888_v27 = vpop.permute.xlu0 %1887 }
 0xcbc   : > { %v1893_v38 = vadd.f32 %v1888_v27, %v1883_v36 }
 0xcbd   : > { %v1890_v39 = vpop.permute.xlu1 %1889 }
 0xcbe   : > { %1895 = vst.msk [vmem:[#allocation4] sm:$0xff] %vm786_vm6, %v1893_v38  ;;  %v1894_v40 = vadd.f32 %v1890_v39, %v1884_v9 }
 0xcc0   : > { %1896 = vst.msk [vmem:[#allocation4 + $0x8] sm:$0xff] %vm786_vm6, %v1894_v40 }
 0xcc5   : > { %v1897_v28 = vld [vmem:[#allocation4] sm:$0xff] }
 0xcc6   : > { %v1899_v43 = vmul.f32 %v2872_v37, %v1897_v28 }
 0xcc7   : > { %v1898_v42 = vld [vmem:[#allocation4 + $0x8] sm:$0xff] }
 0xcc8   : > { %v1900_v44 = vmul.f32 %v2875_v41, %v1898_v42 }
 0xcca   : > { %v1901_v45 = vpack.c.bf16 %v1900_v44, %v1899_v43 }
 0xccc   : > { %2393 = vmatmul.mubr.msk.bf16.vlgmr.msra.gmra.mrb[24].mxu1 %vm786_vm6, %v1901_v45 }
 0xd9f   : > { %v1962_v47 = vpop.f32.mrb[24].mxu1 }
 0xda0   : > { %v1963_v48 = vadd.f32 %v2285_v46, %v1962_v47  ;;  %v2394_v49 = vpop.f32.mrb[25].mxu1 }
 0xda1   : > { %v1965_v50 = vpop.f32.mrb[26].mxu1 }
 0xda2   : > { %v1969_v51 = vmul.f32 %v2872_v37, %v1963_v48  ;;  %v1966_v52 = vadd.f32 %v2285_v46, %v1965_v50  ;;  %v2395_v53 = vpop.f32.mrb[27].mxu1 }
 0xda4   : > { %v1975_v54 = vmul.f32 1.442695, %v1969_v51  ;;  %1993 = vst.msk [vmem:[%s3231_s24] sm:$0xff] %vm505_vm1, %v1969_v51  ;;  %v1970_v55 = vmul.f32 %v2875_v41, %v1966_v52 }
 0xda6   : > { %2550 = vpow2.f32 %v1975_v54  ;;  %v1977_v56 = vmul.f32 1.442695, %v1970_v55  ;;  %1994 = vst.msk [vmem:[%s3231_s24 + $0x8] sm:$0xff] %vm505_vm1, %v1970_v55 }
 0xda8   : > { %2552 = vpow2.f32 %v1977_v56 }
 0xdb0   : > { %v2551_v57 = vpop.eup %2550 }
 0xdb1   : > { %1981 = vrot.lane.b32.xlu0 %v2551_v57, %s2639_s0 }
 0xdb2   : > { %v2553_v58 = vpop.eup %2552 }
 0xdb3   : > { %1983 = vrot.lane.b32.xlu1 %v2553_v58, %s2639_s0  ;;  %s3250_s0 = scalar_lea.hbm %s3313_s14, %s2296_s2 }
 0xe23   : > { %v1982_v3 = vpop.permute.xlu0 %1981 }
 0xe24   : > { %v1987_v4 = vmul.f32 %v2299_v62, %v1982_v3 }
 0xe25   : > { %v1984_v6 = vpop.permute.xlu1 %1983 }
 0xe26   : > { %v1989_v59 = vadd.f32 %v1987_v4, %v1969_v51  ;;  %v1988_v7 = vmul.f32 %v2300_v0, %v1984_v6 }
 0xe28   : > { %v1990_v63 = vadd.f32 %v1988_v7, %v1970_v55  ;;  %v1991_v2 = vmul.f32 %v2872_v37, %v1989_v59 }
 0xe2a   : > { %1997 = vrot.lane.b32.xlu0 %v1991_v2, %s2640_s15  ;;  %v1992_v8 = vmul.f32 %v2875_v41, %v1990_v63 }
 0xe2c   : > { %1999 = vrot.lane.b32.xlu1 %v1992_v8, %s2640_s15 }
 0xe9c   : > { %v1998_v10 = vpop.permute.xlu0 %1997 }
 0xe9d   : > { %2004 = vst.msk [vmem:[%s3231_s24] sm:$0xff] %vm2003_vm10, %v1998_v10 }
 0xe9e   : > { %v2000_v37 = vpop.permute.xlu1 %1999 }
 0xe9f   : > { %2005 = vst.msk [vmem:[%s3231_s24 + $0x8] sm:$0xff] %vm2003_vm10, %v2000_v37 }
 0xea0   : > { %2579 = shalt.err (!%p2576_p8)
}
 0xea1   : > { %s2580_s26 = scalar_lea.hbm %s3250_s0, 256  ;;  %s2584_s2 = scalar_lea.hbm %s3313_s14, 512 }
 0xea2   : > { %p2581_p9 = scmp.ne.s32.totalorder %s3250_s0, %s2580_s26  ;;  %p2585_p0 = scmp.lt.u32.totalorder %s3250_s0, %s3313_s14 }
 0xea3   : > { %p2586_p1 = scmp.lt.u32.totalorder %s2584_s2, %s2580_s26  ;;  %p2588_p3 = scmp.lt.u32.totalorder %s2580_s26, %s3250_s0 }
 0xea4   : > { %p2582_p12 = pnand %p2581_p9, %p2760_p10 }
 0xea5   : > { %p2587_p2 = por %p2586_p1, %p2585_p0 }
 0xea6   : > { %p2583_p13 = pneg %p2582_p12 }
 0xea7   : > { %p2589_p4 = por %p2588_p3, %p2587_p2 }
 0xea9   : > { %p2590_p5 = pnand %p2589_p4, %p2583_p13 }
 0xeab   : > { %2593 = shalt.err (!%p2590_p5)
}
 0xeac   : > { %s2642_s21 = smov 128   ;;  %s2643_s1 = smov 8  }
 0xead   : > { %2396 = dma.vmem_to_hbm [thread:$0]  (%p2760_p10), %s3252_s17, 256, %s3250_s0, %s3258_s16, %s2642_s21, %s2642_s21, %s2643_s1  }
 0xeae PF: > { %p2402_p6 = scmp.ge.s32.totalorder %s2630_s20, 2  ;;  %s2035_s22 = sand.u32 1, %s2618_s18  }
 0xeaf   : > { %s2036_s30 = scalar_lea.sflag [#allocation9], %s2035_s22 }
 0xeb0   : > { %p2399_p7 = pnand %p2402_p6, %p2764_p11 }
 0xeb2   : > { %2613 = dma.done.wait (!%p2399_p7), %s2036_s30, 256  }
 0xeb3   : > { %2615 = vsyncadd (!%p2399_p7), %s2036_s30, 4294967040  ;;  %s3334_s26 = sld [smem:[#allocation12_spill]]  ;;  %s3335_s0 = sld [smem:[#allocation13_spill]] }
 0xeb4   : > { %p30_p8 = scmp.ge.s32.totalorder %s2747_s23, 4   ;;  %s3336_s18 = smov %s2622_s19 }
 0xeb5   : > { %s3338_s20 = smov %s2747_s23 }
 0xeb6   :  { %32 = sbr.rel (!%p30_p8) target bundleno = 19 (0x13), region = 131 }
 0xeb9   : > { %s3337_s19 = smov %s3334_s26 }
 0xebd   :  { %2041 = vsyncpa [#allocation9], 1 }
 0xebe   :  { %2043 = vsyncpa [#allocation9 + $0x1], 1 }

</bundles_post_ra>
